<compile_context>
chip_gen: v7x
topology: tpu7x:2x2x1
jax: 0.10.0
libtpu: 0.0.40
codegen_flags: <defaults>
</compile_context>

<pallas_src>
import math

import jax
import jax.numpy as jnp
from jax.experimental import pallas as pl
from jax.experimental.pallas import tpu as pltpu

# Small synthetic "BERT" config.
B, S, H = 2, 8, 32          # batch, seq, hidden
NH, DH = 2, 16              # heads, head dim (NH * DH == H)
INTER = 64                  # FFN intermediate size
VOCAB = 100
MAX_POS = 16
TYPE_VOCAB = 2
N_LAYERS = 2
LN_EPS = 1e-12

BS = B * S                  # flattened token rows
BNH = B * NH                # head-batched batch dim
H3 = 3 * H                  # fused QKV width


def _layernorm(x, gamma, beta):
    mu = jnp.mean(x, axis=-1, keepdims=True)
    var = jnp.mean((x - mu) ** 2, axis=-1, keepdims=True)
    inv = jax.lax.rsqrt(var + LN_EPS)
    return (x - mu) * inv * gamma + beta


# ---------------- Pallas kernel: one grid step == one transformer layer ------
# Grid: (N_LAYERS,), "arbitrary".  Per-layer weights are streamed in as (1,...)
# blocks of the (L,...) stacks; the running (BS,H) activation is a VMEM scratch
# that persists across grid steps.  Embedding LN runs at l==0, the lane-dense
# (B,H) CLS block is written at l==N_LAYERS-1.

def bert_layer_kernel(x_ref, mask_ref, embln_ref,
                      wqkv_ref, bqkv_ref, wo_ref, w1_ref, b1_ref, w2_ref,
                      vecs_ref, o_ref, act_ref):
    f32 = jnp.float32
    bf16 = jnp.bfloat16
    l = pl.program_id(0)
    scale = 1.0 / math.sqrt(DH)

    # ---- embedding LayerNorm, only on the first layer step -------------------
    @pl.when(l == 0)
    def _():
        x0 = x_ref[...].astype(f32).reshape(BS, H)
        e = embln_ref[...]                                   # (2, H): [gamma; beta]
        act_ref[...] = _layernorm(x0, e[0:1, :], e[1:2, :])

    x = act_ref[...]                                         # (BS, H) f32, VMEM-resident

    # packed small per-layer vectors: [bo, ln1_g, ln1_b, b2, ln2_g, ln2_b]
    vv = vecs_ref[0]                                         # (6, H) f32
    bo, ln1g, ln1b, b2, ln2g, ln2b = (vv[i:i + 1, :] for i in range(6))

    # additive key mask, head-major batching: (B,1,S) -> (NH*B,1,S)
    addmask = jnp.tile(mask_ref[...], (NH, 1, 1))

    # ---- fused QKV: single (BS,H)x(H,3H) MXU matmul, bf16 operands / f32 acc --
    qkv = jnp.dot(x.astype(bf16), wqkv_ref[0],
                  preferred_element_type=f32) + bqkv_ref[0]  # (BS, 3H) f32

    def head_split(base):
        # (BS, 3H) -> (NH*B, S, DH), head-major.  Static lane slices + a
        # leading-axis concat: transpose-free equivalent of the einshape the
        # review suggested, guaranteed to lower on all generations.
        return jnp.concatenate(
            [qkv[:, base + h * DH: base + (h + 1) * DH].reshape(B, S, DH)
             for h in range(NH)], axis=0)

    q = head_split(0) * scale                                # fold 1/sqrt(DH) once
    k = head_split(H)
    v = head_split(2 * H)

    # ---- attention (scores/softmax in f32; matmul operands bf16) -------------
    # TODO(synk): for S >> 128 switch to a query-tiled flash/online-softmax loop
    # instead of materializing the (NH*B, S, S) score tensor.
    s = jnp.einsum("bqd,bkd->bqk", q.astype(bf16), k.astype(bf16),
                   preferred_element_type=f32) + addmask
    m = jnp.max(s, axis=-1, keepdims=True)
    p = jnp.exp(s - m)
    denom = jnp.sum(p, axis=-1, keepdims=True)
    # Exact divide for parity (fully-masked rows degrade to uniform attention,
    # same as HF's additive-mask behavior).  pl.reciprocal(denom, approx=True)
    # is a free EUP-slot alternative when tolerance allows.
    attn = p / denom
    ctx = jnp.einsum("bqk,bkd->bqd", attn.astype(bf16), v.astype(bf16),
                     preferred_element_type=f32)             # (NH*B, S, DH)

    # heads -> lanes, then ONE K=H output projection against the unsplit Wo
    merged = jnp.concatenate([ctx[h * B:(h + 1) * B] for h in range(NH)],
                             axis=-1).reshape(BS, H)         # (BS, H)
    attn_out = jnp.dot(merged.astype(bf16), wo_ref[0],
                       preferred_element_type=f32) + bo

    h1 = _layernorm(x + attn_out, ln1g, ln1b)

    # ---- FFN ------------------------------------------------------------------
    ff = jnp.dot(h1.astype(bf16), w1_ref[0], preferred_element_type=f32) + b1_ref[0]
    # TODO(synk): stock HF BERT uses exact erf GELU; tanh approx kept for a
    # guaranteed EUP lowering (the reference below matches).
    ff = jax.nn.gelu(ff, approximate=True)
    ff = jnp.dot(ff.astype(bf16), w2_ref[0], preferred_element_type=f32) + b2
    x_new = _layernorm(h1 + ff, ln2g, ln2b)

    act_ref[...] = x_new                                     # carry to next layer

    # ---- lane-dense CLS-only output, written once on the last layer ----------
    @pl.when(l == N_LAYERS - 1)
    def _():
        o_ref[...] = x_new.reshape(B, S, H)[:, 0, :].astype(o_ref.dtype)


# ---------------- wrapper (plain-JAX glue + single pallas_call) --------------

def _stack_layers(layers):
    """Fused/packed per-layer weight stacks (bf16 matmul operands)."""
    bf16 = jnp.bfloat16

    def stk(fn, dtype=None):
        a = jnp.stack([fn(lp) for lp in layers], axis=0)
        return a.astype(dtype) if dtype is not None else a

    w_qkv = stk(lambda lp: jnp.concatenate([lp[0], lp[2], lp[4]], axis=1), bf16)  # (L,H,3H)
    b_qkv = stk(lambda lp: jnp.concatenate([lp[1], lp[3], lp[5]], axis=1))        # (L,1,3H)
    w_o   = stk(lambda lp: lp[6], bf16)                                           # (L,H,H)
    w_1   = stk(lambda lp: lp[10], bf16)                                          # (L,H,INTER)
    b_1   = stk(lambda lp: lp[11])                                                # (L,1,INTER)
    w_2   = stk(lambda lp: lp[12], bf16)                                          # (L,INTER,H)
    # packed small vectors: [bo, ln1_g, ln1_b, b2, ln2_g, ln2_b]
    vecs  = stk(lambda lp: jnp.concatenate(
        [lp[7], lp[8], lp[9], lp[13], lp[14], lp[15]], axis=0))                   # (L,6,H)
    return w_qkv, b_qkv, w_o, w_1, b_1, w_2, vecs


def text_encoder_forward(params, input_ids, attention_mask):
    """Mimics TextEncoder.forward: returns last_hidden_state[:, 0, :] (CLS)."""
    # TODO(synk): embedding gather left in plain JAX (tiny gather; no clean
    # Pallas win at this scale).
    word = jnp.take(params["word_emb"], input_ids, axis=0)               # (B,S,H)
    x_emb = (word + params["pos_emb"][:S][None]
             + params["type_emb"][0][None, None]).astype(jnp.float32)

    addmask = ((1.0 - attention_mask.astype(jnp.float32)) * -1e9)[:, None, :]  # (B,1,S)
    emb_ln = jnp.concatenate([params["emb_ln_g"], params["emb_ln_b"]], axis=0)  # (2,H)

    w_qkv, b_qkv, w_o, w_1, b_1, w_2, vecs = _stack_layers(params["layers"])

    in_specs = [
        pl.BlockSpec((B, S, H), lambda l: (0, 0, 0)),        # x_emb (resident)
        pl.BlockSpec((B, 1, S), lambda l: (0, 0, 0)),        # additive mask
        pl.BlockSpec((2, H), lambda l: (0, 0)),              # emb LN gamma/beta
        pl.BlockSpec((1, H, H3), lambda l: (l, 0, 0)),       # fused Wqkv (bf16)
        pl.BlockSpec((1, 1, H3), lambda l: (l, 0, 0)),       # fused bqkv
        pl.BlockSpec((1, H, H), lambda l: (l, 0, 0)),        # Wo (bf16)
        pl.BlockSpec((1, H, INTER), lambda l: (l, 0, 0)),    # W1 (bf16)
        pl.BlockSpec((1, 1, INTER), lambda l: (l, 0, 0)),    # b1
        pl.BlockSpec((1, INTER, H), lambda l: (l, 0, 0)),    # W2 (bf16)
        pl.BlockSpec((1, 6, H), lambda l: (l, 0, 0)),        # packed small vecs
    ]
    out_spec = pl.BlockSpec((B, H), lambda l: (0, 0))        # CLS-only, resident

    # TODO(synk): at real BERT dims add a leading "parallel" batch/row-tile axis
    # (v7x second TensorCore) and >=128-row / 256-lane MXU tiles.
    return pl.pallas_call(
        bert_layer_kernel,
        out_shape=jax.ShapeDtypeStruct((B, H), jnp.float32),
        grid_spec=pltpu.PrefetchScalarGridSpec(
            num_scalar_prefetch=0,
            grid=(N_LAYERS,),
            in_specs=in_specs,
            out_specs=out_spec,
            scratch_shapes=[pltpu.VMEM((BS, H), jnp.float32)],   # running activation
        ),
        compiler_params=pltpu.CompilerParams(
            dimension_semantics=("arbitrary",)),
    )(x_emb, addmask, emb_ln, w_qkv, b_qkv, w_o, w_1, b_1, w_2, vecs)


# ---------------- pure-JAX f32 reference (for sanity check) ------------------

def _ref_layer(x, addmask, lp):
    (wq, bq, wk, bk, wv, bv, wo, bo, ln1g, ln1b, w1, b1, w2, b2, ln2g, ln2b) = lp
    q = x @ wq + bq
    k = x @ wk + bk
    v = x @ wv + bv
    scale = 1.0 / math.sqrt(DH)

    def heads(t):
        return t.reshape(B, S, NH, DH).transpose(0, 2, 1, 3)        # (B, NH, S, DH)

    qh, kh, vh = heads(q) * scale, heads(k), heads(v)
    s = jnp.einsum("bhqd,bhkd->bhqk", qh, kh) + addmask[:, None]
    a = jax.nn.softmax(s, axis=-1)
    ctx = jnp.einsum("bhqk,bhkd->bhqd", a, vh)
    ctx = ctx.transpose(0, 2, 1, 3).reshape(B, S, H)
    h1 = _layernorm(x + (ctx @ wo + bo), ln1g, ln1b)
    ff = jax.nn.gelu(h1 @ w1 + b1, approximate=True) @ w2 + b2
    return _layernorm(h1 + ff, ln2g, ln2b)


def text_encoder_reference(params, input_ids, attention_mask):
    word = jnp.take(params["word_emb"], input_ids, axis=0)
    x = word + params["pos_emb"][:S][None] + params["type_emb"][0][None, None]
    x = _layernorm(x.astype(jnp.float32), params["emb_ln_g"], params["emb_ln_b"])
    addmask = ((1.0 - attention_mask.astype(jnp.float32)) * -1e9)[:, None, :]
    for lp in params["layers"]:
        x = _ref_layer(x, addmask, lp)
    return x[:, 0, :]


# ---------------- deterministic parameter init --------------------------------
# TODO(synk): pretrained HF weight loading (AutoModel.from_pretrained) is not
# reproducible in-script; deterministic synthetic BERT-style weights are used.

def init_params(key):
    std = 0.02
    ks = iter(jax.random.split(key, 8 + N_LAYERS * 8))

    def nrm(shape):
        return jax.random.normal(next(ks), shape, jnp.float32) * std

    params = {
        "word_emb": nrm((VOCAB, H)),
        "pos_emb": nrm((MAX_POS, H)),
        "type_emb": nrm((TYPE_VOCAB, H)),
        "emb_ln_g": jnp.ones((1, H), jnp.float32),
        "emb_ln_b": jnp.zeros((1, H), jnp.float32),
        "layers": [],
    }
    for _ in range(N_LAYERS):
        lp = (
            nrm((H, H)), jnp.zeros((1, H), jnp.float32),        # Wq, bq
            nrm((H, H)), jnp.zeros((1, H), jnp.float32),        # Wk, bk
            nrm((H, H)), jnp.zeros((1, H), jnp.float32),        # Wv, bv
            nrm((H, H)), jnp.zeros((1, H), jnp.float32),        # Wo, bo
            jnp.ones((1, H), jnp.float32), jnp.zeros((1, H), jnp.float32),    # LN1
            nrm((H, INTER)), jnp.zeros((1, INTER), jnp.float32),              # W1, b1
            nrm((INTER, H)), jnp.zeros((1, H), jnp.float32),                  # W2, b2
            jnp.ones((1, H), jnp.float32), jnp.zeros((1, H), jnp.float32),    # LN2
        )
        params["layers"].append(lp)
    return params


if __name__ == "__main__":
    key = jax.random.PRNGKey(0)
    pkey, ikey = jax.random.split(key)
    params = init_params(pkey)

    input_ids = jax.random.randint(ikey, (B, S), 0, VOCAB, dtype=jnp.int32)
    attention_mask = jnp.array(
        [[1] * S, [1] * (S - 2) + [0, 0]], dtype=jnp.int32)      # second example padded

    cls = text_encoder_forward(params, input_ids, attention_mask)
    cls = jax.block_until_ready(cls)
    assert cls.shape == (B, H)

    ref = text_encoder_reference(params, input_ids, attention_mask)
    # Kernel uses bf16 MXU operands (f32 accumulation); reference is pure f32,
    # so allow bf16-level operand-rounding error.
    assert jnp.allclose(cls, ref, atol=2e-2, rtol=2e-2), "mismatch vs reference"

    print("KERNEL_OK")
</pallas_src>

<mosaic_0001>
module attributes {stable_mosaic.version = 11 : i64} {
  func.func @bert_layer_kernel(%arg0: i32, %arg1: memref<2x8x32xf32, #tpu.memory_space<vmem>>, %arg2: memref<2x1x8xf32, #tpu.memory_space<vmem>>, %arg3: memref<2x32xf32, #tpu.memory_space<vmem>>, %arg4: memref<1x32x96xbf16, #tpu.memory_space<vmem>>, %arg5: memref<1x1x96xf32, #tpu.memory_space<vmem>>, %arg6: memref<1x32x32xbf16, #tpu.memory_space<vmem>>, %arg7: memref<1x32x64xbf16, #tpu.memory_space<vmem>>, %arg8: memref<1x1x64xf32, #tpu.memory_space<vmem>>, %arg9: memref<1x64x32xbf16, #tpu.memory_space<vmem>>, %arg10: memref<1x6x32xf32, #tpu.memory_space<vmem>>, %arg11: memref<2x32xf32, #tpu.memory_space<vmem>>, %arg12: memref<16x32xf32, #tpu.memory_space<vmem>>) attributes {dimension_semantics = [#tpu.dimension_semantics<arbitrary>], iteration_bounds = array<i64: 2>, scalar_prefetch = 0 : i64, scratch_operands = 1 : i64, tpu.core_type = #tpu.core_type<tc>, window_params = [{pipeline_mode = #tpu.pipeline_mode<synchronous>, transform_indices = @transform_0, window_bounds = array<i64: 2, 8, 32>}, {pipeline_mode = #tpu.pipeline_mode<synchronous>, transform_indices = @transform_1, window_bounds = array<i64: 2, 1, 8>}, {pipeline_mode = #tpu.pipeline_mode<synchronous>, transform_indices = @transform_2, window_bounds = array<i64: 2, 32>}, {transform_indices = @transform_3, window_bounds = array<i64: 1, 32, 96>}, {transform_indices = @transform_4, window_bounds = array<i64: 1, 1, 96>}, {transform_indices = @transform_5, window_bounds = array<i64: 1, 32, 32>}, {transform_indices = @transform_6, window_bounds = array<i64: 1, 32, 64>}, {transform_indices = @transform_7, window_bounds = array<i64: 1, 1, 64>}, {transform_indices = @transform_8, window_bounds = array<i64: 1, 64, 32>}, {transform_indices = @transform_9, window_bounds = array<i64: 1, 6, 32>}, {pipeline_mode = #tpu.pipeline_mode<synchronous>, transform_indices = @transform_10, window_bounds = array<i64: 2, 32>}]} {
    %c0_i32 = arith.constant 0 : i32
    %0 = arith.cmpi eq, %arg0, %c0_i32 : i32
    %1 = arith.extui %0 : i1 to i32
    %c0_i32_0 = arith.constant 0 : i32
    %2 = arith.cmpi ne, %1, %c0_i32_0 : i32
    scf.if %2 {
      %c0_51 = arith.constant 0 : index
      %c0_52 = arith.constant 0 : index
      %c0_53 = arith.constant 0 : index
      %143 = vector.load %arg1[%c0_51, %c0_52, %c0_53] : memref<2x8x32xf32, #tpu.memory_space<vmem>>, vector<2x8x32xf32>
      %144 = vector.shape_cast %143 : vector<2x8x32xf32> to vector<16x32xf32>
      %c0_54 = arith.constant 0 : index
      %c0_55 = arith.constant 0 : index
      %145 = vector.load %arg3[%c0_54, %c0_55] : memref<2x32xf32, #tpu.memory_space<vmem>>, vector<2x32xf32>
      %146 = vector.extract_strided_slice %145 {offsets = [0, 0], sizes = [1, 32], strides = [1, 1]} : vector<2x32xf32> to vector<1x32xf32>
      %147 = vector.extract_strided_slice %145 {offsets = [1, 0], sizes = [1, 32], strides = [1, 1]} : vector<2x32xf32> to vector<1x32xf32>
      %cst_56 = arith.constant dense<0.000000e+00> : vector<16xf32>
      %148 = vector.multi_reduction <add>, %144, %cst_56 [1] : vector<16x32xf32> to vector<16xf32>
      %149 = vector.shape_cast %148 : vector<16xf32> to vector<16x1xf32>
      %cst_57 = arith.constant 3.200000e+01 : f32
      %150 = vector.broadcast %cst_57 : f32 to vector<16x1xf32>
      %151 = arith.divf %149, %150 : vector<16x1xf32>
      %152 = vector.broadcast %151 : vector<16x1xf32> to vector<16x32xf32>
      %153 = arith.subf %144, %152 : vector<16x32xf32>
      %154 = arith.mulf %153, %153 : vector<16x32xf32>
      %cst_58 = arith.constant dense<0.000000e+00> : vector<16xf32>
      %155 = vector.multi_reduction <add>, %154, %cst_58 [1] : vector<16x32xf32> to vector<16xf32>
      %156 = vector.shape_cast %155 : vector<16xf32> to vector<16x1xf32>
      %cst_59 = arith.constant 3.200000e+01 : f32
      %157 = vector.broadcast %cst_59 : f32 to vector<16x1xf32>
      %158 = arith.divf %156, %157 : vector<16x1xf32>
      %cst_60 = arith.constant 9.99999996E-13 : f32
      %159 = vector.broadcast %cst_60 : f32 to vector<16x1xf32>
      %160 = arith.addf %158, %159 : vector<16x1xf32>
      %161 = math.rsqrt %160 : vector<16x1xf32>
      %162 = vector.broadcast %151 : vector<16x1xf32> to vector<16x32xf32>
      %163 = arith.subf %144, %162 : vector<16x32xf32>
      %164 = vector.broadcast %161 : vector<16x1xf32> to vector<16x32xf32>
      %165 = arith.mulf %163, %164 : vector<16x32xf32>
      %166 = vector.broadcast %146 : vector<1x32xf32> to vector<16x32xf32>
      %167 = arith.mulf %165, %166 : vector<16x32xf32>
      %168 = vector.broadcast %147 : vector<1x32xf32> to vector<16x32xf32>
      %169 = arith.addf %167, %168 : vector<16x32xf32>
      %c0_61 = arith.constant 0 : index
      %c0_62 = arith.constant 0 : index
      %170 = vector.load %arg12[%c0_61, %c0_62] : memref<16x32xf32, #tpu.memory_space<vmem>>, vector<16x32xf32>
      tpu.vector_store %arg12[%c0_61, %c0_62], %169 {strides = array<i32>} : memref<16x32xf32, #tpu.memory_space<vmem>>, vector<16x32xf32>,
    } else {
    }
    %c0 = arith.constant 0 : index
    %c0_1 = arith.constant 0 : index
    %3 = vector.load %arg12[%c0, %c0_1] : memref<16x32xf32, #tpu.memory_space<vmem>>, vector<16x32xf32>
    %c0_2 = arith.constant 0 : index
    %c0_3 = arith.constant 0 : index
    %c0_4 = arith.constant 0 : index
    %4 = vector.load %arg10[%c0_2, %c0_3, %c0_4] : memref<1x6x32xf32, #tpu.memory_space<vmem>>, vector<1x6x32xf32>
    %5 = vector.shape_cast %4 : vector<1x6x32xf32> to vector<6x32xf32>
    %6 = vector.extract_strided_slice %5 {offsets = [0, 0], sizes = [1, 32], strides = [1, 1]} : vector<6x32xf32> to vector<1x32xf32>
    %7 = vector.extract_strided_slice %5 {offsets = [1, 0], sizes = [1, 32], strides = [1, 1]} : vector<6x32xf32> to vector<1x32xf32>
    %8 = vector.extract_strided_slice %5 {offsets = [2, 0], sizes = [1, 32], strides = [1, 1]} : vector<6x32xf32> to vector<1x32xf32>
    %9 = vector.extract_strided_slice %5 {offsets = [3, 0], sizes = [1, 32], strides = [1, 1]} : vector<6x32xf32> to vector<1x32xf32>
    %10 = vector.extract_strided_slice %5 {offsets = [4, 0], sizes = [1, 32], strides = [1, 1]} : vector<6x32xf32> to vector<1x32xf32>
    %11 = vector.extract_strided_slice %5 {offsets = [5, 0], sizes = [1, 32], strides = [1, 1]} : vector<6x32xf32> to vector<1x32xf32>
    %c0_5 = arith.constant 0 : index
    %c0_6 = arith.constant 0 : index
    %c0_7 = arith.constant 0 : index
    %12 = vector.load %arg2[%c0_5, %c0_6, %c0_7] : memref<2x1x8xf32, #tpu.memory_space<vmem>>, vector<2x1x8xf32>
    %13 = tpu.concatenate %12, %12 in 0 : vector<2x1x8xf32>, vector<2x1x8xf32> -> vector<4x1x8xf32>
    %14 = arith.truncf %3 : vector<16x32xf32> to vector<16x32xbf16>
    %c0_8 = arith.constant 0 : index
    %c0_9 = arith.constant 0 : index
    %c0_10 = arith.constant 0 : index
    %15 = vector.load %arg4[%c0_8, %c0_9, %c0_10] : memref<1x32x96xbf16, #tpu.memory_space<vmem>>, vector<1x32x96xbf16>
    %16 = vector.shape_cast %15 : vector<1x32x96xbf16> to vector<32x96xbf16>
    %cst = arith.constant dense<0.000000e+00> : vector<16x96xf32>
    %17 = tpu.matmul %14, %16, %cst {dimension_numbers = #tpu.dot_dimension_numbers<[1], [0], [0], [1], [0, 0, 1, 1], [], []>} : vector<16x32xbf16>, vector<32x96xbf16>, vector<16x96xf32> -> vector<16x96xf32>
    %c0_11 = arith.constant 0 : index
    %c0_12 = arith.constant 0 : index
    %c0_13 = arith.constant 0 : index
    %18 = vector.load %arg5[%c0_11, %c0_12, %c0_13] : memref<1x1x96xf32, #tpu.memory_space<vmem>>, vector<1x1x96xf32>
    %19 = vector.shape_cast %18 : vector<1x1x96xf32> to vector<1x96xf32>
    %20 = vector.broadcast %19 : vector<1x96xf32> to vector<16x96xf32>
    %21 = arith.addf %17, %20 : vector<16x96xf32>
    %22 = vector.extract_strided_slice %21 {offsets = [0, 0], sizes = [16, 16], strides = [1, 1]} : vector<16x96xf32> to vector<16x16xf32>
    %23 = vector.shape_cast %22 : vector<16x16xf32> to vector<2x8x16xf32>
    %24 = vector.extract_strided_slice %21 {offsets = [0, 16], sizes = [16, 16], strides = [1, 1]} : vector<16x96xf32> to vector<16x16xf32>
    %25 = vector.shape_cast %24 : vector<16x16xf32> to vector<2x8x16xf32>
    %26 = tpu.concatenate %23, %25 in 0 : vector<2x8x16xf32>, vector<2x8x16xf32> -> vector<4x8x16xf32>
    %cst_14 = arith.constant 2.500000e-01 : f32
    %27 = vector.broadcast %cst_14 : f32 to vector<4x8x16xf32>
    %28 = arith.mulf %26, %27 : vector<4x8x16xf32>
    %29 = vector.extract_strided_slice %21 {offsets = [0, 32], sizes = [16, 16], strides = [1, 1]} : vector<16x96xf32> to vector<16x16xf32>
    %30 = vector.shape_cast %29 : vector<16x16xf32> to vector<2x8x16xf32>
    %31 = vector.extract_strided_slice %21 {offsets = [0, 48], sizes = [16, 16], strides = [1, 1]} : vector<16x96xf32> to vector<16x16xf32>
    %32 = vector.shape_cast %31 : vector<16x16xf32> to vector<2x8x16xf32>
    %33 = tpu.concatenate %30, %32 in 0 : vector<2x8x16xf32>, vector<2x8x16xf32> -> vector<4x8x16xf32>
    %34 = vector.extract_strided_slice %21 {offsets = [0, 64], sizes = [16, 16], strides = [1, 1]} : vector<16x96xf32> to vector<16x16xf32>
    %35 = vector.shape_cast %34 : vector<16x16xf32> to vector<2x8x16xf32>
    %36 = vector.extract_strided_slice %21 {offsets = [0, 80], sizes = [16, 16], strides = [1, 1]} : vector<16x96xf32> to vector<16x16xf32>
    %37 = vector.shape_cast %36 : vector<16x16xf32> to vector<2x8x16xf32>
    %38 = tpu.concatenate %35, %37 in 0 : vector<2x8x16xf32>, vector<2x8x16xf32> -> vector<4x8x16xf32>
    %39 = arith.truncf %28 : vector<4x8x16xf32> to vector<4x8x16xbf16>
    %40 = arith.truncf %33 : vector<4x8x16xf32> to vector<4x8x16xbf16>
    "tpu.trace_start"() <{level = 10 : i32, message = "bqd,bkd->bqk"}> : () -> ()
    %cst_15 = arith.constant dense<0.000000e+00> : vector<4x8x8xf32>
    %41 = tpu.matmul %39, %40, %cst_15 {dimension_numbers = #tpu.dot_dimension_numbers<[2], [2], [1], [1], [0, 0, 0, 1, 1, 1], [0], [0]>} : vector<4x8x16xbf16>, vector<4x8x16xbf16>, vector<4x8x8xf32> -> vector<4x8x8xf32>
    "tpu.trace_stop"() : () -> ()
    %42 = vector.broadcast %13 : vector<4x1x8xf32> to vector<4x8x8xf32>
    %43 = arith.addf %41, %42 : vector<4x8x8xf32>
    %cst_16 = arith.constant dense<0xFF800000> : vector<4x8xf32>
    %44 = vector.multi_reduction <maximumf>, %43, %cst_16 [2] : vector<4x8x8xf32> to vector<4x8xf32>
    %45 = vector.shape_cast %44 : vector<4x8xf32> to vector<4x8x1xf32>
    %46 = vector.broadcast %45 : vector<4x8x1xf32> to vector<4x8x8xf32>
    %47 = arith.subf %43, %46 : vector<4x8x8xf32>
    %48 = math.exp %47 : vector<4x8x8xf32>
    %cst_17 = arith.constant dense<0.000000e+00> : vector<4x8xf32>
    %49 = vector.multi_reduction <add>, %48, %cst_17 [2] : vector<4x8x8xf32> to vector<4x8xf32>
    %50 = vector.shape_cast %49 : vector<4x8xf32> to vector<4x8x1xf32>
    %51 = vector.broadcast %50 : vector<4x8x1xf32> to vector<4x8x8xf32>
    %52 = arith.divf %48, %51 : vector<4x8x8xf32>
    %53 = arith.truncf %52 : vector<4x8x8xf32> to vector<4x8x8xbf16>
    %54 = arith.truncf %38 : vector<4x8x16xf32> to vector<4x8x16xbf16>
    "tpu.trace_start"() <{level = 10 : i32, message = "bqk,bkd->bqd"}> : () -> ()
    %cst_18 = arith.constant dense<0.000000e+00> : vector<4x8x16xf32>
    %55 = tpu.matmul %53, %54, %cst_18 {dimension_numbers = #tpu.dot_dimension_numbers<[2], [1], [1], [2], [0, 0, 0, 1, 1, 2], [0], [0]>} : vector<4x8x8xbf16>, vector<4x8x16xbf16>, vector<4x8x16xf32> -> vector<4x8x16xf32>
    "tpu.trace_stop"() : () -> ()
    %56 = vector.extract_strided_slice %55 {offsets = [0, 0, 0], sizes = [2, 8, 16], strides = [1, 1, 1]} : vector<4x8x16xf32> to vector<2x8x16xf32>
    %57 = vector.extract_strided_slice %55 {offsets = [2, 0, 0], sizes = [2, 8, 16], strides = [1, 1, 1]} : vector<4x8x16xf32> to vector<2x8x16xf32>
    %58 = tpu.concatenate %56, %57 in 2 : vector<2x8x16xf32>, vector<2x8x16xf32> -> vector<2x8x32xf32>
    %59 = vector.shape_cast %58 : vector<2x8x32xf32> to vector<16x32xf32>
    %60 = arith.truncf %59 : vector<16x32xf32> to vector<16x32xbf16>
    %c0_19 = arith.constant 0 : index
    %c0_20 = arith.constant 0 : index
    %c0_21 = arith.constant 0 : index
    %61 = vector.load %arg6[%c0_19, %c0_20, %c0_21] : memref<1x32x32xbf16, #tpu.memory_space<vmem>>, vector<1x32x32xbf16>
    %62 = vector.shape_cast %61 : vector<1x32x32xbf16> to vector<32x32xbf16>
    %cst_22 = arith.constant dense<0.000000e+00> : vector<16x32xf32>
    %63 = tpu.matmul %60, %62, %cst_22 {dimension_numbers = #tpu.dot_dimension_numbers<[1], [0], [0], [1], [0, 0, 1, 1], [], []>} : vector<16x32xbf16>, vector<32x32xbf16>, vector<16x32xf32> -> vector<16x32xf32>
    %64 = vector.broadcast %6 : vector<1x32xf32> to vector<16x32xf32>
    %65 = arith.addf %63, %64 : vector<16x32xf32>
    %66 = arith.addf %3, %65 : vector<16x32xf32>
    %cst_23 = arith.constant dense<0.000000e+00> : vector<16xf32>
    %67 = vector.multi_reduction <add>, %66, %cst_23 [1] : vector<16x32xf32> to vector<16xf32>
    %68 = vector.shape_cast %67 : vector<16xf32> to vector<16x1xf32>
    %cst_24 = arith.constant 3.200000e+01 : f32
    %69 = vector.broadcast %cst_24 : f32 to vector<16x1xf32>
    %70 = arith.divf %68, %69 : vector<16x1xf32>
    %71 = vector.broadcast %70 : vector<16x1xf32> to vector<16x32xf32>
    %72 = arith.subf %66, %71 : vector<16x32xf32>
    %73 = arith.mulf %72, %72 : vector<16x32xf32>
    %cst_25 = arith.constant dense<0.000000e+00> : vector<16xf32>
    %74 = vector.multi_reduction <add>, %73, %cst_25 [1] : vector<16x32xf32> to vector<16xf32>
    %75 = vector.shape_cast %74 : vector<16xf32> to vector<16x1xf32>
    %cst_26 = arith.constant 3.200000e+01 : f32
    %76 = vector.broadcast %cst_26 : f32 to vector<16x1xf32>
    %77 = arith.divf %75, %76 : vector<16x1xf32>
    %cst_27 = arith.constant 9.99999996E-13 : f32
    %78 = vector.broadcast %cst_27 : f32 to vector<16x1xf32>
    %79 = arith.addf %77, %78 : vector<16x1xf32>
    %80 = math.rsqrt %79 : vector<16x1xf32>
    %81 = vector.broadcast %70 : vector<16x1xf32> to vector<16x32xf32>
    %82 = arith.subf %66, %81 : vector<16x32xf32>
    %83 = vector.broadcast %80 : vector<16x1xf32> to vector<16x32xf32>
    %84 = arith.mulf %82, %83 : vector<16x32xf32>
    %85 = vector.broadcast %7 : vector<1x32xf32> to vector<16x32xf32>
    %86 = arith.mulf %84, %85 : vector<16x32xf32>
    %87 = vector.broadcast %8 : vector<1x32xf32> to vector<16x32xf32>
    %88 = arith.addf %86, %87 : vector<16x32xf32>
    %89 = arith.truncf %88 : vector<16x32xf32> to vector<16x32xbf16>
    %c0_28 = arith.constant 0 : index
    %c0_29 = arith.constant 0 : index
    %c0_30 = arith.constant 0 : index
    %90 = vector.load %arg7[%c0_28, %c0_29, %c0_30] : memref<1x32x64xbf16, #tpu.memory_space<vmem>>, vector<1x32x64xbf16>
    %91 = vector.shape_cast %90 : vector<1x32x64xbf16> to vector<32x64xbf16>
    %cst_31 = arith.constant dense<0.000000e+00> : vector<16x64xf32>
    %92 = tpu.matmul %89, %91, %cst_31 {dimension_numbers = #tpu.dot_dimension_numbers<[1], [0], [0], [1], [0, 0, 1, 1], [], []>} : vector<16x32xbf16>, vector<32x64xbf16>, vector<16x64xf32> -> vector<16x64xf32>
    %c0_32 = arith.constant 0 : index
    %c0_33 = arith.constant 0 : index
    %c0_34 = arith.constant 0 : index
    %93 = vector.load %arg8[%c0_32, %c0_33, %c0_34] : memref<1x1x64xf32, #tpu.memory_space<vmem>>, vector<1x1x64xf32>
    %94 = vector.shape_cast %93 : vector<1x1x64xf32> to vector<1x64xf32>
    %95 = vector.broadcast %94 : vector<1x64xf32> to vector<16x64xf32>
    %96 = arith.addf %92, %95 : vector<16x64xf32>
    %97 = arith.mulf %96, %96 : vector<16x64xf32>
    %98 = arith.mulf %96, %97 : vector<16x64xf32>
    %cst_35 = arith.constant 4.471500e-02 : f32
    %99 = vector.broadcast %cst_35 : f32 to vector<16x64xf32>
    %100 = arith.mulf %99, %98 : vector<16x64xf32>
    %101 = arith.addf %96, %100 : vector<16x64xf32>
    %cst_36 = arith.constant 0.797884583 : f32
    %102 = vector.broadcast %cst_36 : f32 to vector<16x64xf32>
    %103 = arith.mulf %102, %101 : vector<16x64xf32>
    %104 = math.tanh %103 : vector<16x64xf32>
    %cst_37 = arith.constant 1.000000e+00 : f32
    %105 = vector.broadcast %cst_37 : f32 to vector<16x64xf32>
    %106 = arith.addf %105, %104 : vector<16x64xf32>
    %cst_38 = arith.constant 5.000000e-01 : f32
    %107 = vector.broadcast %cst_38 : f32 to vector<16x64xf32>
    %108 = arith.mulf %107, %106 : vector<16x64xf32>
    %109 = arith.mulf %96, %108 : vector<16x64xf32>
    %110 = arith.truncf %109 : vector<16x64xf32> to vector<16x64xbf16>
    %c0_39 = arith.constant 0 : index
    %c0_40 = arith.constant 0 : index
    %c0_41 = arith.constant 0 : index
    %111 = vector.load %arg9[%c0_39, %c0_40, %c0_41] : memref<1x64x32xbf16, #tpu.memory_space<vmem>>, vector<1x64x32xbf16>
    %112 = vector.shape_cast %111 : vector<1x64x32xbf16> to vector<64x32xbf16>
    %cst_42 = arith.constant dense<0.000000e+00> : vector<16x32xf32>
    %113 = tpu.matmul %110, %112, %cst_42 {dimension_numbers = #tpu.dot_dimension_numbers<[1], [0], [0], [1], [0, 0, 1, 1], [], []>} : vector<16x64xbf16>, vector<64x32xbf16>, vector<16x32xf32> -> vector<16x32xf32>
    %114 = vector.broadcast %9 : vector<1x32xf32> to vector<16x32xf32>
    %115 = arith.addf %113, %114 : vector<16x32xf32>
    %116 = arith.addf %88, %115 : vector<16x32xf32>
    %cst_43 = arith.constant dense<0.000000e+00> : vector<16xf32>
    %117 = vector.multi_reduction <add>, %116, %cst_43 [1] : vector<16x32xf32> to vector<16xf32>
    %118 = vector.shape_cast %117 : vector<16xf32> to vector<16x1xf32>
    %cst_44 = arith.constant 3.200000e+01 : f32
    %119 = vector.broadcast %cst_44 : f32 to vector<16x1xf32>
    %120 = arith.divf %118, %119 : vector<16x1xf32>
    %121 = vector.broadcast %120 : vector<16x1xf32> to vector<16x32xf32>
    %122 = arith.subf %116, %121 : vector<16x32xf32>
    %123 = arith.mulf %122, %122 : vector<16x32xf32>
    %cst_45 = arith.constant dense<0.000000e+00> : vector<16xf32>
    %124 = vector.multi_reduction <add>, %123, %cst_45 [1] : vector<16x32xf32> to vector<16xf32>
    %125 = vector.shape_cast %124 : vector<16xf32> to vector<16x1xf32>
    %cst_46 = arith.constant 3.200000e+01 : f32
    %126 = vector.broadcast %cst_46 : f32 to vector<16x1xf32>
    %127 = arith.divf %125, %126 : vector<16x1xf32>
    %cst_47 = arith.constant 9.99999996E-13 : f32
    %128 = vector.broadcast %cst_47 : f32 to vector<16x1xf32>
    %129 = arith.addf %127, %128 : vector<16x1xf32>
    %130 = math.rsqrt %129 : vector<16x1xf32>
    %131 = vector.broadcast %120 : vector<16x1xf32> to vector<16x32xf32>
    %132 = arith.subf %116, %131 : vector<16x32xf32>
    %133 = vector.broadcast %130 : vector<16x1xf32> to vector<16x32xf32>
    %134 = arith.mulf %132, %133 : vector<16x32xf32>
    %135 = vector.broadcast %10 : vector<1x32xf32> to vector<16x32xf32>
    %136 = arith.mulf %134, %135 : vector<16x32xf32>
    %137 = vector.broadcast %11 : vector<1x32xf32> to vector<16x32xf32>
    %138 = arith.addf %136, %137 : vector<16x32xf32>
    %c0_48 = arith.constant 0 : index
    %c0_49 = arith.constant 0 : index
    %139 = vector.load %arg12[%c0_48, %c0_49] : memref<16x32xf32, #tpu.memory_space<vmem>>, vector<16x32xf32>
    tpu.vector_store %arg12[%c0_48, %c0_49], %138 {strides = array<i32>} : memref<16x32xf32, #tpu.memory_space<vmem>>, vector<16x32xf32>,
    %c1_i32 = arith.constant 1 : i32
    %140 = arith.cmpi eq, %arg0, %c1_i32 : i32
    %141 = arith.extui %140 : i1 to i32
    %c0_i32_50 = arith.constant 0 : i32
    %142 = arith.cmpi ne, %141, %c0_i32_50 : i32
    scf.if %142 {
      %143 = vector.shape_cast %138 : vector<16x32xf32> to vector<2x8x32xf32>
      %144 = vector.extract_strided_slice %143 {offsets = [0, 0, 0], sizes = [2, 1, 32], strides = [1, 1, 1]} : vector<2x8x32xf32> to vector<2x1x32xf32>
      %145 = vector.shape_cast %144 : vector<2x1x32xf32> to vector<2x32xf32>
      %c0_51 = arith.constant 0 : index
      %c0_52 = arith.constant 0 : index
      %146 = vector.load %arg11[%c0_51, %c0_52] : memref<2x32xf32, #tpu.memory_space<vmem>>, vector<2x32xf32>
      tpu.vector_store %arg11[%c0_51, %c0_52], %145 {strides = array<i32>} : memref<2x32xf32, #tpu.memory_space<vmem>>, vector<2x32xf32>,
    } else {
    }
    return
  }
  func.func @transform_0(%arg0: i32) -> (i32, i32, i32) {
    %c0_i32 = arith.constant 0 : i32
    %c0_i32_0 = arith.constant 0 : i32
    %c0_i32_1 = arith.constant 0 : i32
    %c0_i32_2 = arith.constant 0 : i32
    return %c0_i32, %c0_i32_0, %c0_i32_1 : i32, i32, i32
  }
  func.func @transform_1(%arg0: i32) -> (i32, i32, i32) {
    %c0_i32 = arith.constant 0 : i32
    %c0_i32_0 = arith.constant 0 : i32
    %c0_i32_1 = arith.constant 0 : i32
    %c0_i32_2 = arith.constant 0 : i32
    return %c0_i32, %c0_i32_0, %c0_i32_1 : i32, i32, i32
  }
  func.func @transform_2(%arg0: i32) -> (i32, i32) {
    %c0_i32 = arith.constant 0 : i32
    %c0_i32_0 = arith.constant 0 : i32
    %c0_i32_1 = arith.constant 0 : i32
    return %c0_i32, %c0_i32_0 : i32, i32
  }
  func.func @transform_3(%arg0: i32) -> (i32, i32, i32) {
    %c0_i32 = arith.constant 0 : i32
    %c0_i32_0 = arith.constant 0 : i32
    %c0_i32_1 = arith.constant 0 : i32
    return %arg0, %c0_i32, %c0_i32_0 : i32, i32, i32
  }
  func.func @transform_4(%arg0: i32) -> (i32, i32, i32) {
    %c0_i32 = arith.constant 0 : i32
    %c0_i32_0 = arith.constant 0 : i32
    %c0_i32_1 = arith.constant 0 : i32
    return %arg0, %c0_i32, %c0_i32_0 : i32, i32, i32
  }
  func.func @transform_5(%arg0: i32) -> (i32, i32, i32) {
    %c0_i32 = arith.constant 0 : i32
    %c0_i32_0 = arith.constant 0 : i32
    %c0_i32_1 = arith.constant 0 : i32
    return %arg0, %c0_i32, %c0_i32_0 : i32, i32, i32
  }
  func.func @transform_6(%arg0: i32) -> (i32, i32, i32) {
    %c0_i32 = arith.constant 0 : i32
    %c0_i32_0 = arith.constant 0 : i32
    %c0_i32_1 = arith.constant 0 : i32
    return %arg0, %c0_i32, %c0_i32_0 : i32, i32, i32
  }
  func.func @transform_7(%arg0: i32) -> (i32, i32, i32) {
    %c0_i32 = arith.constant 0 : i32
    %c0_i32_0 = arith.constant 0 : i32
    %c0_i32_1 = arith.constant 0 : i32
    return %arg0, %c0_i32, %c0_i32_0 : i32, i32, i32
  }
  func.func @transform_8(%arg0: i32) -> (i32, i32, i32) {
    %c0_i32 = arith.constant 0 : i32
    %c0_i32_0 = arith.constant 0 : i32
    %c0_i32_1 = arith.constant 0 : i32
    return %arg0, %c0_i32, %c0_i32_0 : i32, i32, i32
  }
  func.func @transform_9(%arg0: i32) -> (i32, i32, i32) {
    %c0_i32 = arith.constant 0 : i32
    %c0_i32_0 = arith.constant 0 : i32
    %c0_i32_1 = arith.constant 0 : i32
    return %arg0, %c0_i32, %c0_i32_0 : i32, i32, i32
  }
  func.func @transform_10(%arg0: i32) -> (i32, i32) {
    %c0_i32 = arith.constant 0 : i32
    %c0_i32_0 = arith.constant 0 : i32
    %c0_i32_1 = arith.constant 0 : i32
    return %c0_i32, %c0_i32_0 : i32, i32
  }
}

</mosaic_0001>

<bundles_post_ra>
// kernel: tpu_custom_call.1
= control target key start
LH: loop header
LB: loop body
LE: loop exit
PB: predicated region body
PF: predicated region fallthrough
CT: control target
= control target key end

     0   :  { %s2480_s0 = inlined_call_operand.vmem [shape: f32[2,8,32], index: 0, kind: input, shape index: {}]   ;;  %s2481_s1 = inlined_call_operand.vmem [shape: f32[2,1,8], index: 1, kind: input, shape index: {}]   ;;  %s2482_s2 = inlined_call_operand.hbm [shape: f32[2,32], index: 2, kind: input, shape index: {}]   ;;  %s2483_s3 = inlined_call_operand.vmem [shape: bf16[2,32,96], index: 3, kind: input, shape index: {}]   ;;  %s2484_s4 = inlined_call_operand.hbm [shape: f32[2,1,96], index: 4, kind: input, shape index: {}]   ;;  %s2485_s5 = inlined_call_operand.vmem [shape: bf16[2,32,32], index: 5, kind: input, shape index: {}]   ;;  %s2486_s6 = inlined_call_operand.vmem [shape: bf16[2,32,64], index: 6, kind: input, shape index: {}]   ;;  %s2487_s7 = inlined_call_operand.hbm [shape: f32[2,1,64], index: 7, kind: input, shape index: {}]   ;;  %s2488_s8 = inlined_call_operand.vmem [shape: bf16[2,64,32], index: 8, kind: input, shape index: {}]   ;;  %s2489_s9 = inlined_call_operand.vmem [shape: f32[2,6,32], index: 9, kind: input, shape index: {}]   ;;  %s2490_s10 = inlined_call_operand.hbm [shape: f32[2,32], index: 10, kind: output, shape index: {}]  }
   0x1   :  { %2494 = sst [smem:[#allocation14_spill]] %s2482_s2 }
   0x2   :  { %2495 = sst [smem:[#allocation15_spill]] %s2483_s3 }
   0x3   :  { %2496 = sst [smem:[#allocation16_spill]] %s2484_s4 }
   0x4   :  { %2497 = sst [smem:[#allocation17_spill]] %s2487_s7 }
   0x5   :  { %15 = vsyncpa [#allocation4], 0 }
   0x6   :  { %16 = vsyncpa [#allocation7], 0 }
   0x7   :  { %18 = vsyncpa [#allocation7 + $0x1], 0 }
   0x8   :  { %19 = vsyncpa [#allocation5], 0  ;;  %s2082_s13 = smov 0   ;;  %s2084_s14 = smov 0  }
   0x9   :  { %s2086_s15 = smov 0   ;;  %s2088_s16 = smov 0  }
   0xa LB: > { %s2103_s17 = sadd.s32 1, %s2015_s16   ;;  %s121_s18 = sadd.s32 1, %s2011_s15  ;;  %s2015_s16 = sphi %s2088_s16, %s2516_s16   ;;  %s2011_s15 = sphi %s2086_s15, %s2515_s15   ;;  %s2007_s14 = sphi %s2084_s14, %s2514_s14   ;;  %s2003_s13 = sphi %s2082_s13, %s2513_s13  }
   0xb   : > { %s118_s19 = ssub.s32 %s2015_s16, %s2103_s17  ;;  %p128_p0 = scmp.ne.s32.totalorder %s2011_s15, %s2007_s14 }
   0xc   : > { %p119_p1 = scmp.eq.s32.totalorder %s118_s19, 0  ;;  %p129_p2 = scmp.eq.s32.totalorder %s2015_s16, 0 }
   0xd   : > { %p1768_p3 = scmp.lt.s32.totalorder %s2015_s16, 2  ;;  %s334_s21 = sand.u32 1, %s2015_s16  }
   0xe   : > { %s2113_s20 = scalar_select %p119_p1, %s2011_s15, %s121_s18  }
   0xf   : > { %p130_p4 = por %p129_p2, %p128_p0  ;;  %s336_s22 = sand.u32 1, %s2011_s15  }
  0x10   : > { %2498 = sst [smem:[#allocation13_spill]] %s2113_s20  ;;  %s1581_s23 = sshll.u32 %s2015_s16, 4 }
  0x11   : > { %s2499_s4 = sld [smem:[#allocation16_spill]]  ;;  %s337_s27 = scalar_lea.vmem [#allocation6], %s336_s22 }
  0x12   : > { %s344_s28 = sshll.u32 %s337_s27, 4  ;;  %p2129_p5 = pnand %p1768_p3, %p130_p4  ;;  %s2127_s28 = int_to_ptr.vmem [resolvable:$true] %s344_s28 }
  0x13   : > { %s2133_s30 = scalar_lea.sflag [#allocation7], %s334_s21 }
  0x14   : > { %p1861_p7 = pneg %p2129_p5 }
  0x17   : > { %s2123_s26 = scalar_lea.hbm %s2499_s4, %s1581_s23  ;;  %s1864_s19 = scalar_lea.hbm %s2499_s4, 32 }
  0x18   : > { %s1859_s11 = scalar_lea.hbm %s2123_s26, 16  ;;  %p1865_p10 = scmp.lt.u32.totalorder %s2123_s26, %s2499_s4 }
  0x19   : > { %p1860_p6 = scmp.ne.s32.totalorder %s2123_s26, %s1859_s11  ;;  %p1866_p11 = scmp.lt.u32.totalorder %s1864_s19, %s1859_s11 }
  0x1a   : > { %p1868_p13 = scmp.lt.u32.totalorder %s1859_s11, %s2123_s26 }
  0x1b   : > { %p1862_p8 = pnand %p1861_p7, %p1860_p6  ;;  %p1867_p12 = por %p1866_p11, %p1865_p10 }
  0x1d   : > { %p1863_p9 = pneg %p1862_p8  ;;  %p1869_p0 = por %p1868_p13, %p1867_p12 }
  0x1f   : > { %p1870_p1 = pnand %p1869_p0, %p1863_p9 }
  0x21   : > { %1873 = shalt.err (!%p1870_p1)
}
  0x22   : > { %s1874_s21 = scalar_lea.vmem %s2127_s28, 16  ;;  %s2017_s27 = smov [#allocation6]  }
  0x23   : > { %p1875_p2 = scmp.ne.s32.totalorder %s2127_s28, %s1874_s21  ;;  %s1879_s12 = sshll.u32 %s2017_s27, 4  ;;  %s1880_s12 = int_to_ptr.vmem [resolvable:$false] %s1879_s12 }
  0x24   : > { %s1881_s18 = scalar_lea.vmem %s1880_s12, 32  ;;  %p1882_p6 = scmp.lt.s32.totalorder %s2127_s28, %s1880_s12 }
  0x25   : > { %p1877_p3 = pnand %p1875_p2, %p1861_p7  ;;  %p1883_p8 = scmp.lt.s32.totalorder %s1881_s18, %s1874_s21 }
  0x27   : > { %p1878_p4 = pneg %p1877_p3  ;;  %p1884_p10 = por %p1883_p8, %p1882_p6 }
  0x29   : > { %p1885_p11 = pnand %p1884_p10, %p1878_p4 }
  0x2b   : > { %1888 = shalt.err (!%p1885_p11)
}
  0x2c   : > { %1763 = dma.hbm_to_vmem [thread:$0]  (!%p2129_p5), %s2123_s26, 16, %s2127_s28, %s2133_s30  }
  0x2d   : > { %s2162_s11 = sadd.s32 4294967295, %s2015_s16   ;;  %p134_p9 = scmp.ne.s32.totalorder %s2007_s14, %s2003_s13 }
  0x2e   : > { %p2491_p12 = scmp.eq.s32.totalorder %s2162_s11, 0  ;;  %p1578_p13 = scmp.ge.s32.totalorder %s2015_s16, 1 }
  0x2f   : > { %p296_p0 = scmp.lt.s32.totalorder %s2015_s16, 3  ;;  %s2018_s26 = smov [#allocation3]  }
  0x30   : > { %p2171_p1 = por %p2491_p12, %p134_p9  ;;  %s315_s28 = sshll.u32 %s2018_s26, 4  ;;  %s2193_s28 = int_to_ptr.vmem [resolvable:$true] %s315_s28 }
  0x31   : > { %p2176_p3 = pnand %p1578_p13, %p296_p0  ;;  %s370_s25 = scalar_lea.vmem [#allocation8], %s336_s22 }
  0x32   : > { %s2501_s19 = scalar_select %p2171_p1, 1, 0 }
  0x33   : > { %s2502_s24 = scalar_select %p2176_p3, 1, 0 }
  0x34   : > { %s377_s13 = sshll.u32 %s370_s25, 4  ;;  %s2503_s7 = sld [smem:[#allocation17_spill]]  ;;  %s2191_s13 = int_to_ptr.vmem [resolvable:$true] %s377_s13 }
  0x35   : > { %p1756_p4 = pneg %p2176_p3 }
  0x37   : > { %p2197_p6 = pnand %p1756_p4, %p2491_p12 }
  0x3a   : > { %s2187_s12 = scalar_lea.hbm %s2503_s7, %s1581_s23  ;;  %s1894_s26 = scalar_lea.hbm %s2503_s7, 32 }
  0x3b   : > { %s1889_s16 = scalar_lea.hbm %s2187_s12, 16  ;;  %p1895_p9 = scmp.lt.u32.totalorder %s2187_s12, %s2503_s7 }
  0x3c   : > { %p1890_p8 = scmp.ne.s32.totalorder %s2187_s12, %s1889_s16  ;;  %p1896_p13 = scmp.lt.u32.totalorder %s1894_s26, %s1889_s16 }
  0x3d   : > { %p1898_p4 = scmp.lt.u32.totalorder %s1889_s16, %s2187_s12 }
  0x3e   : > { %p1892_p10 = pnand %p1890_p8, %p1861_p7  ;;  %p1897_p0 = por %p1896_p13, %p1895_p9 }
  0x40   : > { %p1893_p11 = pneg %p1892_p10  ;;  %p1899_p2 = por %p1898_p4, %p1897_p0 }
  0x42   : > { %p1900_p12 = pnand %p1899_p2, %p1893_p11 }
  0x44   : > { %1903 = shalt.err (!%p1900_p12)
}
  0x45   : > { %s1904_s27 = scalar_lea.vmem %s2191_s13, 16  ;;  %s2019_s23 = smov [#allocation8]  }
  0x46   : > { %p1905_p8 = scmp.ne.s32.totalorder %s2191_s13, %s1904_s27  ;;  %s1909_s18 = sshll.u32 %s2019_s23, 4  ;;  %s1910_s18 = int_to_ptr.vmem [resolvable:$false] %s1909_s18 }
  0x47   : > { %s1911_s25 = scalar_lea.vmem %s1910_s18, 32  ;;  %p1912_p3 = scmp.lt.s32.totalorder %s2191_s13, %s1910_s18 }
  0x48   : > { %p1907_p10 = pnand %p1905_p8, %p1861_p7  ;;  %p1913_p9 = scmp.lt.s32.totalorder %s1911_s25, %s1904_s27 }
  0x4a   : > { %p1908_p1 = pneg %p1907_p10  ;;  %p1914_p13 = por %p1913_p9, %p1912_p3 }
  0x4c   : > { %p1915_p0 = pnand %p1914_p13, %p1908_p1 }
  0x4e   : > { %1918 = shalt.err (!%p1915_p0)
}
  0x4f   : > { %1766 = dma.hbm_to_vmem [thread:$0]  (!%p2129_p5), %s2187_s12, 16, %s2191_s13, %s2133_s30  }
  0x50   : > { %s2505_s2 = sld [smem:[#allocation14_spill]]  ;;  %p1921_p12 = pneg %p2197_p6 }
  0x56   : > { %s1919_s21 = scalar_lea.hbm %s2505_s2, 32 }
  0x57   : > { %p1920_p7 = scmp.ne.s32.totalorder %s2505_s2, %s1919_s21  ;;  %p1926_p3 = scmp.lt.u32.totalorder %s1919_s21, %s2505_s2 }
  0x59   : > { %p1922_p2 = pnand %p1921_p12, %p1920_p7 }
  0x5b   : > { %p1923_p1 = pneg %p1922_p2 }
  0x5d   : > { %p1928_p11 = pnand %p1926_p3, %p1923_p1 }
  0x5f   : > { %1931 = shalt.err (!%p1928_p11)
}
  0x60   : > { %s1932_s29 = scalar_lea.vmem %s2193_s28, 32  ;;  %p1940_p10 = scmp.lt.s32.totalorder %s2193_s28, %s2193_s28 }
  0x61   : > { %p1933_p5 = scmp.ne.s32.totalorder %s2193_s28, %s1932_s29  ;;  %p1941_p9 = scmp.lt.s32.totalorder %s1932_s29, %s1932_s29 }
  0x63   : > { %p1935_p4 = pnand %p1933_p5, %p1921_p12  ;;  %p1942_p13 = por %p1941_p9, %p1940_p10 }
  0x65   : > { %p1936_p8 = pneg %p1935_p4 }
  0x67   : > { %p1943_p0 = pnand %p1942_p13, %p1936_p8 }
  0x69   : > { %1946 = shalt.err (!%p1943_p0)
}
  0x6a   : > { %1759 = dma.hbm_to_vmem [thread:$0]  (!%p2197_p6), %s2505_s2, 32, %s2193_s28, [#allocation4]  }
  0x6b   : > { %p2506_p7 = scmp.ne.s32.totalorder %s2502_s24, 0 }
  0x6c   : > { %p2507_p2 = scmp.eq.s32.totalorder (!%p2506_p7), %s2162_s11, 0 }
  0x6d   : > { %401 = sbr.rel (%p2506_p7) target bundleno = 3114 (0xc2a), region = 60 }
  0x74   : > { %1990 = dma.done.wait (%p2507_p2), [#allocation4], 32   ;;  %p2508_p12 = pmov %p2507_p2 }
  0x75   : > { %s407_s13 = sand.u32 1, %s2162_s11   ;;  %s409_s12 = sand.u32 1, %s2007_s14  }
  0x76   : > { %1992 = vsyncadd (%p2508_p12), [#allocation4], 4294967264  ;;  %s408_s22 = scalar_lea.sflag [#allocation7], %s407_s13  ;;  %s2254_s25 = scalar_lea.vmem [#allocation6], %s409_s12 }
  0x77   : > { %p2509_p1 = scmp.ne.s32.totalorder %s2501_s19, 0 }
  0x79   : > { %1994 = dma.done.wait (%p2509_p1), %s408_s22, 32  }
  0x7a   : > { %1996 = vsyncadd (%p2509_p1), %s408_s22, 4294967264  ;;  %p477_p6 = scmp.lt.s32.totalorder %s2162_s11, 1  ;;  %s2510_s3 = sld [smem:[#allocation15_spill]] }
  0x7b   : > { %p2511_p3 = scmp.ne.s32.totalorder %s2162_s11, 0 }
  0x7c   : > { %s478_s24 = scalar_select %p477_p6, %s2162_s11, 1 }
  0x7d   : > { %505 = sbr.rel (%p2511_p3) target bundleno = 444 (0x1bc), region = 76  ;;  %v506_v0 = vld [vmem:[%s2480_s0] sm:$0xff] (!%p2511_p3)  ;;  %vm509_vm0 = vcmask (!%p2511_p3), 261120   ;;  %v507_v1 = vld [vmem:[%s2480_s0 + $0x8] sm:$0xff] (!%p2511_p3)  ;;  %v537_v16 = vlaneseq (!%p2511_p3)  ;;  %v508_v23 = vld [vmem:[#allocation3] sm:$0x3] (!%p2511_p3) }
  0x7e   : > { %s1626_s28 = sshll.u32 %s478_s24, 4  ;;  %s1629_s16 = sshll.u32 %s478_s24, 5  ;;  %v510_v2 = vsel (!%p2511_p3), %vm509_vm0, %v506_v0, 0.0  ;;  %v513_v3 = vsel (!%p2511_p3), %vm509_vm0, %v507_v1, 0.0 }
  0x7f   : > { %s2270_s29 = scalar_lea.vmem %s2485_s5, %s1626_s28  ;;  %s2275_s19 = scalar_lea.vmem %s2486_s6, %s1626_s28  ;;  %511 = vadd.xlane.f32.xlu0 (!%p2511_p3), %v510_v2  ;;  %v538_v20 = vshrl.u32 (!%p2511_p3), %v537_v16, 7 }
  0x80   : > { %s2265_s23 = scalar_lea.vmem %s2510_s3, %s1626_s28  ;;  %s2280_s2 = scalar_lea.vmem %s2488_s8, %s1629_s16 }
  0x81   : > { %s1593_s7 = sshll.u32 %s478_s24, 3  ;;  %s2287_s3 = scalar_lea.vmem [#allocation8], %s409_s12  ;;  %v539_v22 = vsub.s32 (!%p2511_p3), 0, %v538_v20  ;;  %v545_v24 = vsub.s32 (!%p2511_p3), 1, %v538_v20 }
  0x82   : > { %s2285_s21 = scalar_lea.vmem %s2489_s9, %s1593_s7 }
  0x83   : > { %514 = vadd.xlane.f32.xlu0 (!%p2511_p3), %v513_v3  ;;  %v540_v25 = vrot.slane (!%p2511_p3), %v508_v23, %v539_v22  ;;  %v546_v27 = vrot.slane (!%p2511_p3), %v508_v23, %v545_v24 }
 0x10c   : > { %v512_v4 = vpop.xlane.xlu0 %511 }
 0x10d   : > { %v517_v5 = vmul.f32 0.03125, %v512_v4 }
 0x10f   : > { %v519_v6 = vsub.f32 %v506_v0, %v517_v5 }
 0x110   : > { %v515_v7 = vpop.xlane.xlu0 %514 }
 0x111   : > { %v518_v8 = vmul.f32 0.03125, %v515_v7  ;;  %v521_v9 = vmul.f32 %v519_v6, %v519_v6 }
 0x113   : > { %v520_v10 = vsub.f32 %v507_v1, %v518_v8  ;;  %v523_v11 = vsel %vm509_vm0, %v521_v9, 0.0 }
 0x114   : > { %524 = vadd.xlane.f32.xlu1 %v523_v11 }
 0x115   : > { %v522_v12 = vmul.f32 %v520_v10, %v520_v10 }
 0x117   : > { %v526_v13 = vsel %vm509_vm0, %v522_v12, 0.0 }
 0x118   : > { %527 = vadd.xlane.f32.xlu1 %v526_v13 }
 0x1a1   : > { %v525_v14 = vpop.xlane.xlu1 %524 }
 0x1a2   : > { %v529_v15 = vmul.f32 0.03125, %v525_v14 }
 0x1a4   : > { %v531_v17 = vadd.f32 1e-12, %v529_v15 }
 0x1a5   : > { %v528_v18 = vpop.xlane.xlu1 %527 }
 0x1a6   : > { %1812 = vrsqrt.f32 %v531_v17  ;;  %v530_v19 = vmul.f32 0.03125, %v528_v18 }
 0x1a8   : > { %v532_v21 = vadd.f32 1e-12, %v530_v19 }
 0x1aa   : > { %1814 = vrsqrt.f32 %v532_v21 }
 0x1b0   : > { %v1813_v26 = vpop.eup %1812 }
 0x1b1   : > { %v535_v28 = vmul.f32 %v1813_v26, %v519_v6 }
 0x1b3   : > { %v541_v29 = vmul.f32 %v540_v25, %v535_v28 }
 0x1b4   : > { %v1815_v30 = vpop.eup %1814 }
 0x1b5   : > { %v547_v31 = vadd.f32 %v546_v27, %v541_v29  ;;  %v536_v32 = vmul.f32 %v1815_v30, %v520_v10 }
 0x1b7   : > { %549 = vst.msk [vmem:[#allocation2] sm:$0xff] %vm509_vm0, %v547_v31  ;;  %v542_v33 = vmul.f32 %v540_v25, %v536_v32 }
 0x1b9   : > { %v548_v34 = vadd.f32 %v546_v27, %v542_v33 }
 0x1bb   : > { %550 = vst.msk [vmem:[#allocation2 + $0x8] sm:$0xff] %vm509_vm0, %v548_v34 }
 0x1bc PF: > { %v1821_v35 = vld [vmem:[%s2265_s23] sm:$0xff]   ;;  %v2020_v36 = vmov 0.0   ;;  %v1822_v37 = vld [vmem:[%s2265_s23 + $0x8] sm:$0xff]   ;;  %vm2021_vm1 = vmmov 0   ;;  %vm580_vm2 = vcmask 261120   ;;  %s2022_s7 = smov 112  }
 0x1bd   : > { %1660 = vmatprep.subr.bf16.mxu0 %v2020_v36  ;;  %1668 = vmatprep.subr.bf16.mxu1 %v2020_v36  ;;  %v1595_v41 = vld [vmem:[%s2254_s25] ss:$0 sm:$0xff]  ;;  %s2023_s20 = smov 96   ;;  %vm660_vm3 = vcmask 130048   ;;  %vm854_vm4 = vcmask 64512   ;;  %s2024_s23 = smov 64  }
 0x1be   : > { %1661 = vmatpush3.bf16.msra.mxu0 %v1821_v35  ;;  %1664 = vmatprep.mubr.msk.bf16.mxu0 %vm2021_vm1, %v2020_v36  ;;  %v2309_v38 = vld [vmem:[#allocation2] sm:$0xff]  ;;  %vm908_vm5 = vcmask 1043456   ;;  %s2025_s30 = smov 16   ;;  %vm1335_vm6 = vcmask 523264   ;;  %p1621_p11 = scmp.ne.s32.totalorder %s2162_s11, 1 }
 0x1bf   : > { %1662 = vmatprep.subr.bf16.mxu0 %v2020_v36  ;;  %1670 = vmatprep.mubr.msk.bf16.mxu1 %vm2021_vm1, %v2020_v36  ;;  %v1599_v6 = vld [vmem:[%s2481_s1] ss:$0 sm:$0xff]  ;;  %v1600_v11 = vld [vmem:[%s2481_s1 + $0x1] ss:$0 sm:$0xff]  ;;  %vm1429_vm7 = vcmask (!%p1621_p11), 1041409   ;;  %vm1432_vm8 = vcmask (!%p1621_p11), 254976  }
 0x1c2   : > { %v2311_v39 = vld [vmem:[#allocation2 + $0x8] sm:$0xff]  ;;  %1663 = vmatpush3.bf16.msra.mxu0 %v1822_v37 }
 0x1c3   : > { %v556_v40 = vpack.c.bf16 %v2311_v39, %v2309_v38  ;;  %1674 = vmatprep.subr.bf16.mxu0 %v2020_v36 }
 0x1c5   : > { %1665 = vmatmul.mubr.msk.bf16.vlgmr.msra.gmra.mrb[0].mxu0 %vm580_vm2, %v556_v40 }
 0x1c6   : > { %1676 = vmatprep.mubr.msk.bf16.mxu0 %vm2021_vm1, %v2020_v36 }
 0x298   : > { %v618_v42 = vpop.f32.mrb[0].mxu0 }
 0x299   : > { %v619_v43 = vadd.f32 %v1595_v41, %v618_v42  ;;  %v1666_v44 = vpop.f32.mrb[1].mxu0 }
 0x29a   : > { %v621_v45 = vpop.f32.mrb[2].mxu0 }
 0x29b   : > { %v622_v46 = vadd.f32 %v1595_v41, %v621_v45  ;;  %627 = vrot.lane.b32.xlu0 %v619_v43, %s2022_s7  ;;  %v1667_v47 = vpop.f32.mrb[3].mxu0  ;;  %v641_v48 = vpack.c.bf16 %v619_v43, %v619_v43  ;;  %v633_v55 = vmul.f32 0.25, %v619_v43 }
 0x29d   : > { %658 = vrot.lane.b32.xlu1 %v641_v48, %s2023_s20  ;;  %v2323_v49 = vpack.c.bf16 %v622_v46, %v622_v46  ;;  %v637_v59 = vpack.c.bf16 %v633_v55, %v633_v55  ;;  %v634_v60 = vmul.f32 0.25, %v622_v46 }
 0x29f   : > { %629 = vrot.lane.b32.xlu0 %v622_v46, %s2022_s7  ;;  %v638_v61 = vpack.c.bf16 %v634_v60, %v634_v60 }
 0x2a1   : > { %708 = vrot.lane.b32.xlu1 %v2323_v49, %s2023_s20 }
 0x30d   : > { %v628_v50 = vpop.permute.xlu0 %627 }
 0x30e   : > { %v2326_v51 = vpack.c.bf16 %v628_v50, %v628_v50  ;;  %v635_v0 = vmul.f32 0.25, %v628_v50 }
 0x30f   : > { %v659_v52 = vpop.permute.xlu1 %658 }
 0x310   : > { %757 = vrot.lane.b32.xlu0 %v2326_v51, %s2023_s20  ;;  %v665_v53 = vsel %vm660_vm3, %v659_v52, 0  ;;  %v639_v3 = vpack.c.bf16 %v635_v0, %v635_v0 }
 0x311   : > { %1669 = vmatpush3.bf16.xpose.msra.mxu1 %v665_v53  ;;  %v630_v54 = vpop.permute.xlu0 %629 }
 0x312   : > { %v2330_v56 = vpack.c.bf16 %v630_v54, %v630_v54  ;;  %1680 = vmatprep.subr.bf16.mxu1 %v2020_v36  ;;  %v636_v4 = vmul.f32 0.25, %v630_v54 }
 0x313   : > { %v709_v57 = vpop.permute.xlu1 %708 }
 0x314   : > { %v714_v58 = vsel %vm660_vm3, %v709_v57, 0  ;;  %806 = vrot.lane.b32.xlu1 %v2330_v56, %s2023_s20  ;;  %v640_v5 = vpack.c.bf16 %v636_v4, %v636_v4 }
 0x315   : > { %1675 = vmatpush3.bf16.xpose.msra.mxu0 %v714_v58 }
 0x316   : > { %1686 = vmatprep.subr.bf16.mxu0 %v2020_v36 }
 0x318   : > { %1671 = vmatmul.mubr.msk.bf16.vlgmr.msra.gmra.mrb[0].mxu1 %vm660_vm3, %v637_v59 }
 0x319   : > { %1682 = vmatprep.mubr.msk.bf16.mxu1 %vm2021_vm1, %v2020_v36 }
 0x31c   : > { %1677 = vmatmul.mubr.msk.bf16.vlgmr.msra.gmra.mrb[4].mxu0 %vm660_vm3, %v638_v61 }
 0x31d   : > { %1688 = vmatprep.mubr.msk.bf16.mxu0 %vm2021_vm1, %v2020_v36 }
 0x382   : > { %v758_v62 = vpop.permute.xlu0 %757 }
 0x383   : > { %v763_v63 = vsel %vm660_vm3, %v758_v62, 0 }
 0x384   : > { %1681 = vmatpush3.bf16.xpose.msra.mxu1 %v763_v63 }
 0x385   : > { %1692 = vmatprep.subr.bf16.mxu1 %v2020_v36 }
 0x386   : > { %v807_v1 = vpop.permute.xlu1 %806 }
 0x387   : > { %v812_v2 = vsel %vm660_vm3, %v807_v1, 0 }
 0x388   : > { %1687 = vmatpush3.bf16.xpose.msra.mxu0 %v812_v2 }
 0x389   : > { %1698 = vmatprep.subr.bf16.mxu0 %v2020_v36 }
 0x38b   : > { %1683 = vmatmul.mubr.msk.bf16.vlgmr.msra.gmra.mrb[4].mxu1 %vm660_vm3, %v639_v3 }
 0x38c   : > { %1694 = vmatprep.mubr.msk.bf16.mxu1 %vm2021_vm1, %v2020_v36 }
 0x38f   : > { %1689 = vmatmul.mubr.msk.bf16.vlgmr.msra.gmra.mrb[8].mxu0 %vm660_vm3, %v640_v5 }
 0x390   : > { %1700 = vmatprep.mubr.msk.bf16.mxu0 %vm2021_vm1, %v2020_v36 }
 0x3eb   : > { %v701_v7 = vpop.f32.mrb[0].mxu1 }
 0x3ec   : > { %v702_v8 = vadd.f32 %v1599_v6, %v701_v7  ;;  %v1672_v9 = vpop.f32.mrb[1].mxu1 }
 0x3ed   : > { %v704_v10 = vpop.f32.mrb[2].mxu1 }
 0x3ee   : > { %v1673_v12 = vpop.f32.mrb[3].mxu1  ;;  %v855_v13 = vsel %vm854_vm4, %v702_v8, -inf }
 0x3ef   : > { %856 = vmax.xlane.f32.xlu0 %v855_v13  ;;  %v750_v14 = vpop.f32.mrb[4].mxu0 }
 0x3f0   : > { %v751_v15 = vadd.f32 %v1600_v11, %v750_v14  ;;  %v1678_v16 = vpop.f32.mrb[5].mxu0 }
 0x3f1   : > { %v753_v17 = vpop.f32.mrb[6].mxu0 }
 0x3f2   : > { %v1679_v18 = vpop.f32.mrb[7].mxu0  ;;  %v858_v19 = vsel %vm854_vm4, %v751_v15, -inf }
 0x3f3   : > { %859 = vmax.xlane.f32.xlu1 %v858_v19 }
 0x404   : > { %903 = vrot.lane.b32.xlu1 %v641_v48, %s2024_s23 }
 0x45e   : > { %v799_v20 = vpop.f32.mrb[4].mxu1 }
 0x45f   : > { %v800_v21 = vadd.f32 %v1599_v6, %v799_v20  ;;  %v1684_v22 = vpop.f32.mrb[5].mxu1  ;;  %v1824_v20 = vld [vmem:[%s2270_s29 + $0x8] sm:$0xff]  }
 0x460   : > { %v802_v23 = vpop.f32.mrb[6].mxu1 }
 0x461   : > { %v1685_v24 = vpop.f32.mrb[7].mxu1  ;;  %v861_v25 = vsel %vm854_vm4, %v800_v21, -inf }
 0x462   : > { %862 = vmax.xlane.f32.xlu0 %v861_v25  ;;  %v848_v26 = vpop.f32.mrb[8].mxu0 }
 0x463   : > { %v849_v27 = vadd.f32 %v1600_v11, %v848_v26  ;;  %v1690_v28 = vpop.f32.mrb[9].mxu0 }
 0x464   : > { %v851_v29 = vpop.f32.mrb[10].mxu0 }
 0x465   : > { %v1691_v30 = vpop.f32.mrb[11].mxu0  ;;  %v864_v31 = vsel %vm854_vm4, %v849_v27, -inf }
 0x466   : > { %865 = vmax.xlane.f32.xlu0 %v864_v31 }
 0x47c   : > { %v857_v32 = vpop.xlane.xlu0 %856 }
 0x47d   : > { %v867_v33 = vsub.f32 %v702_v8, %v857_v32 }
 0x47f   : > { %v871_v34 = vmul.f32 1.442695, %v867_v33 }
 0x480   : > { %v860_v35 = vpop.xlane.xlu1 %859 }
 0x481   : > { %1831 = vpow2.f32 %v871_v34  ;;  %v868_v37 = vsub.f32 %v751_v15, %v860_v35  ;;  %v1823_v15 = vld [vmem:[%s2270_s29] sm:$0xff]  }
 0x483   : > { %v873_v40 = vmul.f32 1.442695, %v868_v37 }
 0x484   : > { %v904_v41 = vpop.permute.xlu1 %903 }
 0x485   : > { %1833 = vpow2.f32 %v873_v40  ;;  %v910_v42 = vsel %vm908_vm5, %v904_v41, 0 }
 0x486   : > { %1693 = vmatpush3.bf16.msra.mxu1 %v910_v42 }
 0x487   : > { %1704 = vmatprep.subr.bf16.mxu1 %v2020_v36 }
 0x48b   : > { %v1832_v43 = vpop.eup %1831 }
 0x48c   : > { %v879_v44 = vsel %vm854_vm4, %v1832_v43, 0.0 }
 0x48d   : > { %880 = vadd.xlane.f32.xlu1 %v879_v44 }
 0x48f   : > { %v1834_v45 = vpop.eup %1833 }
 0x490   : > { %v882_v46 = vsel %vm854_vm4, %v1834_v45, 0.0 }
 0x491   : > { %883 = vadd.xlane.f32.xlu0 %v882_v46  ;;  %v2406_v46 = vld [vmem:[%s2285_s21] sm:$0x3f] }
 0x4ef   : > { %v863_v47 = vpop.xlane.xlu0 %862 }
 0x4f0   : > { %v869_v48 = vsub.f32 %v800_v21, %v863_v47 }
 0x4f2   : > { %v875_v50 = vmul.f32 1.442695, %v869_v48 }
 0x4f3   : > { %v866_v52 = vpop.xlane.xlu0 %865 }
 0x4f4   : > { %1835 = vpow2.f32 %v875_v50  ;;  %v870_v53 = vsub.f32 %v849_v27, %v866_v52 }
 0x4f6   : > { %v877_v54 = vmul.f32 1.442695, %v870_v53 }
 0x4f8   : > { %1837 = vpow2.f32 %v877_v54 }
 0x4fe   : > { %v1836_v55 = vpop.eup %1835 }
 0x4ff   : > { %v885_v57 = vsel %vm854_vm4, %v1836_v55, 0.0 }
 0x500   : > { %886 = vadd.xlane.f32.xlu1 %v885_v57 }
 0x502   : > { %v1838_v58 = vpop.eup %1837 }
 0x503   : > { %v888_v59 = vsel %vm854_vm4, %v1838_v58, 0.0 }
 0x504   : > { %889 = vadd.xlane.f32.xlu0 %v888_v59 }
 0x511   : > { %1000 = vrot.lane.b32.xlu1 %v2326_v51, %s2024_s23 }
 0x515   : > { %1048 = vrot.lane.b32.xlu1 %v2330_v56, %s2024_s23 }
 0x51a   : > { %v881_v60 = vpop.xlane.xlu1 %880  ;;  %952 = vrot.lane.b32.xlu0 %v2323_v49, %s2024_s23 }
 0x51b   : > { %1839 = vrcp.f32 %v881_v60 }
 0x51e   : > { %v884_v0 = vpop.xlane.xlu0 %883 }
 0x51f   : > { %1841 = vrcp.f32 %v884_v0 }
 0x525   : > { %v1840_v61 = vpop.eup %1839 }
 0x526   : > { %v892_v62 = vmul.f32 %v1840_v61, %v1832_v43  ;;  %v1111_v43 = vlaneseq }
 0x528   : > { %v899_v63 = vpack.c.bf16 %v892_v62, %v892_v62  ;;  %v2402_v44 = vshrl.u32 %v1111_v43, 7 }
 0x529   : > { %v1842_v51 = vpop.eup %1841 }
 0x52a   : > { %1695 = vmatmul.mubr.msk.bf16.vlgmr.msra.gmra.mrb[8].mxu1 %vm854_vm4, %v899_v63  ;;  %v894_v49 = vmul.f32 %v1842_v51, %v1834_v45  ;;  %v1113_v45 = vsub.s32 0, %v2402_v44 }
 0x52b   : > { %1706 = vmatprep.mubr.msk.bf16.mxu1 %vm2021_vm1, %v2020_v36 }
 0x52c   : > { %v900_v8 = vpack.c.bf16 %v894_v49, %v894_v49  ;;  %v1114_v47 = vrot.slane %v2406_v46, %v1113_v45  ;;  %v1826_v49 = vld [vmem:[%s2275_s19 + $0x8] sm:$0xff]  }
 0x58d   : > { %v887_v1 = vpop.xlane.xlu1 %886 }
 0x58e   : > { %1843 = vrcp.f32 %v887_v1 }
 0x591   : > { %v1001_v2 = vpop.permute.xlu1 %1000  ;;  %v890_v56 = vpop.xlane.xlu0 %889 }
 0x592   : > { %v1006_v3 = vsel %vm908_vm5, %v1001_v2, 0  ;;  %1845 = vrcp.f32 %v890_v56 }
 0x593   : > { %1705 = vmatpush3.bf16.msra.mxu1 %v1006_v3 }
 0x594   : > { %1716 = vmatprep.subr.bf16.mxu1 %v2020_v36 }
 0x595   : > { %v953_v4 = vpop.permute.xlu0 %952  ;;  %v1049_v6 = vpop.permute.xlu1 %1048 }
 0x596   : > { %v958_v5 = vsel %vm908_vm5, %v953_v4, 0  ;;  %v1054_v10 = vsel %vm908_vm5, %v1049_v6, 0 }
 0x597   : > { %1699 = vmatpush3.bf16.msra.mxu0 %v958_v5 }
 0x598   : > { %v1844_v7 = vpop.eup %1843  ;;  %1710 = vmatprep.subr.bf16.mxu0 %v2020_v36 }
 0x599   : > { %v896_v9 = vmul.f32 %v1844_v7, %v1836_v55 }
 0x59a   : > { %1701 = vmatmul.mubr.msk.bf16.vlgmr.msra.gmra.mrb[12].mxu0 %vm854_vm4, %v900_v8 }
 0x59b   : > { %1711 = vmatpush3.bf16.msra.mxu0 %v1054_v10  ;;  %v901_v11 = vpack.c.bf16 %v896_v9, %v896_v9  ;;  %1712 = vmatprep.mubr.msk.bf16.mxu0 %vm2021_vm1, %v2020_v36  ;;  %v1202_v10 = vsub.s32 1, %v2402_v44 }
 0x59c   : > { %v1846_v12 = vpop.eup %1845  ;;  %1724 = vmatprep.subr.bf16.mxu0 %v2020_v36 }
 0x59d   : > { %v898_v13 = vmul.f32 %v1846_v12, %v1838_v58  ;;  %1707 = vmatmul.mubr.msk.bf16.vlgmr.msra.gmra.mrb[12].mxu1 %vm854_vm4, %v901_v11  ;;  %v1203_v11 = vrot.slane %v2406_v46, %v1202_v10  ;;  %v1208_v12 = vsub.s32 2, %v2402_v44 }
 0x59e   : > { %1720 = vmatprep.mubr.msk.bf16.mxu1 %vm2021_vm1, %v2020_v36  ;;  %1717 = vmatpush3.bf16.msra.mxu1 %v1823_v15 }
 0x59f   : > { %v902_v14 = vpack.c.bf16 %v898_v13, %v898_v13  ;;  %1718 = vmatprep.subr.bf16.mxu1 %v2020_v36 }
 0x5a2   : > { %1713 = vmatmul.mubr.msk.bf16.vlgmr.msra.gmra.mrb[16].mxu0 %vm854_vm4, %v902_v14  ;;  %1719 = vmatpush3.bf16.msra.mxu1 %v1824_v20 }
 0x5a3   : > { %1728 = vmatprep.mubr.msk.bf16.mxu0 %vm2021_vm1, %v2020_v36  ;;  %1732 = vmatprep.subr.bf16.mxu1 %v2020_v36 }
 0x5fd   : > { %v946_v16 = vpop.f32.mrb[8].mxu1 }
 0x5fe   : > { %v1696_v17 = vpop.f32.mrb[9].mxu1 }
 0x5ff   : > { %v949_v18 = vpop.f32.mrb[10].mxu1 }
 0x600   : > { %v1697_v19 = vpop.f32.mrb[11].mxu1  ;;  %v1209_v18 = vrot.slane %v2406_v46, %v1208_v12 }
 0x66d   : > { %v994_v21 = vpop.f32.mrb[12].mxu0 }
 0x66e   : > { %v1702_v22 = vpop.f32.mrb[13].mxu0 }
 0x66f   : > { %v997_v23 = vpop.f32.mrb[14].mxu0 }
 0x670   : > { %v1703_v24 = vpop.f32.mrb[15].mxu0  ;;  %v1042_v25 = vpop.f32.mrb[12].mxu1  ;;  %v1827_v23 = vld [vmem:[%s2280_s2] sm:$0xff]  }
 0x671   : > { %v1708_v26 = vpop.f32.mrb[13].mxu1  ;;  %v1828_v24 = vld [vmem:[%s2280_s2 + $0x8] sm:$0xff]  }
 0x672   : > { %v1045_v27 = vpop.f32.mrb[14].mxu1  ;;  %v1830_v26 = vld [vmem:[%s2280_s2 + $0x18] sm:$0xff]  }
 0x673   : > { %v1709_v28 = vpop.f32.mrb[15].mxu1  ;;  %v1612_v27 = vld [vmem:[%s2287_s3] ss:$0 sm:$0xff] }
 0x675   : > { %v1090_v29 = vpop.f32.mrb[16].mxu0 }
 0x676   : > { %v1816_v30 = vpack.i.bf16 %v1090_v29, %v1042_v25  ;;  %v1714_v31 = vpop.f32.mrb[17].mxu0  ;;  %v1829_v25 = vld [vmem:[%s2280_s2 + $0x10] sm:$0xff]  }
 0x677   : > { %v1093_v32 = vpop.f32.mrb[18].mxu0 }
 0x678   : > { %1817 = vrot.lane.b32.xlu0 %v1816_v30, %s2025_s30  ;;  %v1715_v33 = vpop.f32.mrb[19].mxu0 }
 0x6ea   : > { %v1818_v34 = vpop.permute.xlu0 %1817 }
 0x6eb   : > { %v1820_v35 = vunpack.i.h.bf16 %v1818_v34  ;;  %v1819_v37 = vunpack.i.l.bf16 %v1818_v34 }
 0x6ed   : > { %v1105_v40 = vsel %vm660_vm3, %v994_v21, %v1820_v35  ;;  %v1104_v41 = vsel %vm660_vm3, %v946_v16, %v1819_v37 }
 0x6ee   : > { %v1106_v42 = vpack.c.bf16 %v1105_v40, %v1104_v41 }
 0x6f0   : > { %1721 = vmatmul.mubr.msk.bf16.vlgmr.msra.gmra.mrb[16].mxu1 %vm580_vm2, %v1106_v42 }
 0x6f1   : > { %1740 = vmatprep.mubr.msk.bf16.mxu1 %vm2021_vm1, %v2020_v36  ;;  %1733 = vmatpush3.bf16.msra.mxu1 %v1827_v23 }
 0x6f2   : > { %1734 = vmatprep.subr.bf16.mxu1 %v2020_v36 }
 0x6f5   : > { %1735 = vmatpush3.bf16.msra.mxu1 %v1828_v24 }
 0x6f6   : > { %1736 = vmatprep.subr.bf16.mxu1 %v2020_v36 }
 0x6f9   : > { %1737 = vmatpush3.bf16.msra.mxu1 %v1829_v25 }
 0x6fa   : > { %1738 = vmatprep.subr.bf16.mxu1 %v2020_v36 }
 0x6fd   : > { %1739 = vmatpush3.bf16.msra.mxu1 %v1830_v26 }
 0x7c3   : > { %v1164_v48 = vpop.f32.mrb[16].mxu1 }
 0x7c4   : > { %v1165_v50 = vadd.f32 %v1164_v48, %v1114_v47  ;;  %v1722_v52 = vpop.f32.mrb[17].mxu1 }
 0x7c5   : > { %v1167_v53 = vpop.f32.mrb[18].mxu1 }
 0x7c6   : > { %v1168_v54 = vadd.f32 %v1167_v53, %v1114_v47  ;;  %v1723_v55 = vpop.f32.mrb[19].mxu1  ;;  %v1171_v57 = vadd.f32 %v1165_v50, %v2309_v38 }
 0x7c8   : > { %v1173_v58 = vsel %vm580_vm2, %v1171_v57, 0.0  ;;  %v1172_v59 = vadd.f32 %v1168_v54, %v2311_v39  ;;  %v1825_v39 = vld [vmem:[%s2275_s19] sm:$0xff]  }
 0x7c9   : > { %1174 = vadd.xlane.f32.xlu1 %v1173_v58  ;;  %1725 = vmatpush3.bf16.msra.mxu0 %v1825_v39 }
 0x7ca   : > { %v1176_v60 = vsel %vm580_vm2, %v1172_v59, 0.0  ;;  %1726 = vmatprep.subr.bf16.mxu0 %v2020_v36 }
 0x7cb   : > { %1177 = vadd.xlane.f32.xlu0 %v1176_v60  ;;  %v1309_v60 = vsub.s32 3, %v2402_v44 }
 0x7cd   : > { %1727 = vmatpush3.bf16.msra.mxu0 %v1826_v49 }
 0x856   : > { %v1175_v61 = vpop.xlane.xlu1 %1174 }
 0x857   : > { %v1180_v62 = vmul.f32 0.03125, %v1175_v61  ;;  %v1310_v61 = vrot.slane %v2406_v46, %v1309_v60 }
 0x858   : > { %v1178_v63 = vpop.xlane.xlu0 %1177 }
 0x859   : > { %v1182_v0 = vsub.f32 %v1171_v57, %v1180_v62  ;;  %v1181_v1 = vmul.f32 0.03125, %v1178_v63 }
 0x85b   : > { %v1183_v51 = vsub.f32 %v1172_v59, %v1181_v1  ;;  %v1184_v2 = vmul.f32 %v1182_v0, %v1182_v0 }
 0x85d   : > { %v1186_v56 = vsel %vm580_vm2, %v1184_v2, 0.0  ;;  %v1185_v38 = vmul.f32 %v1183_v51, %v1183_v51 }
 0x85e   : > { %1187 = vadd.xlane.f32.xlu0 %v1186_v56 }
 0x85f   : > { %v1189_v3 = vsel %vm580_vm2, %v1185_v38, 0.0 }
 0x860   : > { %1190 = vadd.xlane.f32.xlu1 %v1189_v3 }
 0x8eb   : > { %v1188_v4 = vpop.xlane.xlu0 %1187 }
 0x8ec   : > { %v1192_v5 = vmul.f32 0.03125, %v1188_v4 }
 0x8ed   : > { %v1191_v6 = vpop.xlane.xlu1 %1190 }
 0x8ee   : > { %v1194_v7 = vadd.f32 1e-12, %v1192_v5  ;;  %v1193_v8 = vmul.f32 0.03125, %v1191_v6 }
 0x8f0   : > { %1847 = vrsqrt.f32 %v1194_v7  ;;  %v1195_v9 = vadd.f32 1e-12, %v1193_v8 }
 0x8f2   : > { %1849 = vrsqrt.f32 %v1195_v9 }
 0x8fa   : > { %v1848_v13 = vpop.eup %1847 }
 0x8fb   : > { %v1198_v14 = vmul.f32 %v1848_v13, %v1182_v0 }
 0x8fc   : > { %v1850_v15 = vpop.eup %1849 }
 0x8fd   : > { %v1204_v16 = vmul.f32 %v1203_v11, %v1198_v14  ;;  %v1199_v17 = vmul.f32 %v1850_v15, %v1183_v51 }
 0x8ff   : > { %v1205_v19 = vmul.f32 %v1203_v11, %v1199_v17  ;;  %v1210_v20 = vadd.f32 %v1209_v18, %v1204_v16 }
 0x901   : > { %v1211_v21 = vadd.f32 %v1209_v18, %v1205_v19  ;;  %v1410_v19 = vsub.s32 4, %v2402_v44 }
 0x903   : > { %v1212_v22 = vpack.c.bf16 %v1211_v21, %v1210_v20 }
 0x905   : > { %1729 = vmatmul.mubr.msk.bf16.vlgmr.msra.gmra.mrb[20].mxu0 %vm580_vm2, %v1212_v22 }
 0x9d8   : > { %v1273_v28 = vpop.f32.mrb[20].mxu0 }
 0x9d9   : > { %v1274_v29 = vadd.f32 %v1612_v27, %v1273_v28  ;;  %v1730_v30 = vpop.f32.mrb[21].mxu0 }
 0x9da   : > { %v1276_v31 = vpop.f32.mrb[22].mxu0 }
 0x9db   : > { %v1280_v32 = vmul.f32 %v1274_v29, %v1274_v29  ;;  %v1277_v33 = vadd.f32 %v1612_v27, %v1276_v31  ;;  %v1731_v34 = vpop.f32.mrb[23].mxu0 }
 0x9dd   : > { %v1282_v35 = vmul.f32 %v1280_v32, %v1274_v29  ;;  %v1281_v37 = vmul.f32 %v1277_v33, %v1277_v33 }
 0x9df   : > { %v1284_v40 = vmul.f32 0.044715, %v1282_v35  ;;  %v1283_v41 = vmul.f32 %v1281_v37, %v1277_v33 }
 0x9e1   : > { %v1286_v42 = vadd.f32 %v1284_v40, %v1274_v29  ;;  %v1285_v43 = vmul.f32 0.044715, %v1283_v41 }
 0x9e3   : > { %v1288_v45 = vmul.f32 0.7978846, %v1286_v42  ;;  %v1287_v47 = vadd.f32 %v1285_v43, %v1277_v33 }
 0x9e5   : > { %1851 = vtanh.f32 %v1288_v45  ;;  %v1289_v36 = vmul.f32 0.7978846, %v1287_v47 }
 0x9e7   : > { %1853 = vtanh.f32 %v1289_v36 }
 0x9ef   : > { %v1852_v48 = vpop.eup %1851 }
 0x9f0   : > { %v1292_v50 = vadd.f32 1.0, %v1852_v48 }
 0x9f1   : > { %v1854_v52 = vpop.eup %1853 }
 0x9f2   : > { %v1294_v53 = vmul.f32 0.5, %v1292_v50  ;;  %v1293_v54 = vadd.f32 1.0, %v1854_v52 }
 0x9f4   : > { %v1295_v55 = vmul.f32 0.5, %v1293_v54  ;;  %v1296_v57 = vmul.f32 %v1294_v53, %v1274_v29 }
 0x9f6   : > { %v1297_v58 = vmul.f32 %v1295_v55, %v1277_v33 }
 0x9f8   : > { %v1298_v59 = vpack.c.bf16 %v1297_v58, %v1296_v57 }
 0x9fa   : > { %1741 = vmatmul.mubr.msk.bf16.vlgmr.msra.gmra.mrb[20].mxu1 %vm1335_vm6, %v1298_v59 }
 0xacd   : > { %v1373_v62 = vpop.f32.mrb[20].mxu1 }
 0xace   : > { %v1374_v63 = vadd.f32 %v1373_v62, %v1310_v61  ;;  %v1742_v0 = vpop.f32.mrb[21].mxu1 }
 0xacf   : > { %v1376_v1 = vpop.f32.mrb[22].mxu1 }
 0xad0   : > { %v1377_v51 = vadd.f32 %v1376_v1, %v1310_v61  ;;  %v1743_v2 = vpop.f32.mrb[23].mxu1  ;;  %v1380_v56 = vadd.f32 %v1374_v63, %v1210_v20  ;;  %v1416_v20 = vsub.s32 5, %v2402_v44 }
 0xad2   : > { %v1382_v38 = vsel %vm580_vm2, %v1380_v56, 0.0  ;;  %v1381_v3 = vadd.f32 %v1377_v51, %v1211_v21  ;;  %v1411_v21 = vrot.slane %v2406_v46, %v1410_v19  ;;  %v1417_v23 = vrot.slane %v2406_v46, %v1416_v20 }
 0xad3   : > { %1383 = vadd.xlane.f32.xlu0 %v1382_v38 }
 0xad4   : > { %v1385_v39 = vsel %vm580_vm2, %v1381_v3, 0.0 }
 0xad5   : > { %1386 = vadd.xlane.f32.xlu1 %v1385_v39 }
 0xb60   : > { %v1384_v49 = vpop.xlane.xlu0 %1383 }
 0xb61   : > { %v1388_v4 = vmul.f32 0.03125, %v1384_v49 }
 0xb62   : > { %v1387_v5 = vpop.xlane.xlu1 %1386 }
 0xb63   : > { %v1390_v6 = vsub.f32 %v1380_v56, %v1388_v4  ;;  %v1389_v7 = vmul.f32 0.03125, %v1387_v5 }
 0xb65   : > { %v1391_v8 = vsub.f32 %v1381_v3, %v1389_v7  ;;  %v1392_v9 = vmul.f32 %v1390_v6, %v1390_v6 }
 0xb67   : > { %v1394_v10 = vsel %vm580_vm2, %v1392_v9, 0.0  ;;  %v1393_v11 = vmul.f32 %v1391_v8, %v1391_v8 }
 0xb68   : > { %1395 = vadd.xlane.f32.xlu0 %v1394_v10 }
 0xb69   : > { %v1397_v12 = vsel %vm580_vm2, %v1393_v11, 0.0 }
 0xb6a   : > { %1398 = vadd.xlane.f32.xlu1 %v1397_v12 }
 0xbf5   : > { %v1396_v13 = vpop.xlane.xlu0 %1395 }
 0xbf6   : > { %v1400_v14 = vmul.f32 0.03125, %v1396_v13 }
 0xbf7   : > { %v1399_v15 = vpop.xlane.xlu1 %1398 }
 0xbf8   : > { %v1402_v16 = vadd.f32 1e-12, %v1400_v14  ;;  %v1401_v17 = vmul.f32 0.03125, %v1399_v15 }
 0xbfa   : > { %1855 = vrsqrt.f32 %v1402_v16  ;;  %v1403_v18 = vadd.f32 1e-12, %v1401_v17 }
 0xbfc   : > { %1857 = vrsqrt.f32 %v1403_v18 }
 0xc04   : > { %v1856_v22 = vpop.eup %1855 }
 0xc05   : > { %v1406_v24 = vmul.f32 %v1856_v22, %v1390_v6 }
 0xc06   : > { %v1858_v25 = vpop.eup %1857 }
 0xc07   : > { %v1412_v26 = vmul.f32 %v1411_v21, %v1406_v24  ;;  %v1407_v27 = vmul.f32 %v1858_v25, %v1391_v8  ;;  %1425 = sbr.rel (%p1621_p11) target bundleno = 3089 (0xc11), region = 80 }
 0xc09   : > { %v1418_v28 = vadd.f32 %v1417_v23, %v1412_v26  ;;  %v1413_v29 = vmul.f32 %v1411_v21, %v1407_v27 }
 0xc0b   : > { %1420 = vst.msk [vmem:[#allocation2] sm:$0xff] %vm580_vm2, %v1418_v28  ;;  %v1419_v30 = vadd.f32 %v1417_v23, %v1413_v29 }
 0xc0d   : > { %1421 = vst.msk [vmem:[#allocation2 + $0x8] sm:$0xff] %vm580_vm2, %v1419_v30  ;;  %v1428_v44 = vrot.slane (!%p1621_p11), %v1419_v30, 7 }
 0xc0f   : > { %v1430_v31 = vsel %vm1429_vm7, %v1428_v44, %v1418_v28 }
 0xc10   : > { %1433 = vst.msk [vmem:[#allocation9] sm:$0x3] %vm1432_vm8, %v1430_v31 }
 0xc11 PF: > { %p1770_p5 = scmp.eq.s32.totalorder %s2162_s11, 1  ;;  %s2026_s2 = smov [#allocation9]  }
 0xc12   : > { %s1441_s3 = sshll.u32 %s2026_s2, 4  ;;  %s1442_s3 = int_to_ptr.vmem [resolvable:$true] %s1441_s3 }
 0xc13   : > { %s1947_s29 = scalar_lea.vmem %s1442_s3, 32  ;;  %p1954_p9 = scmp.lt.s32.totalorder %s1442_s3, %s1442_s3 }
 0xc14   : > { %p1948_p4 = scmp.ne.s32.totalorder %s1442_s3, %s1947_s29  ;;  %p1955_p13 = scmp.lt.s32.totalorder %s1947_s29, %s1947_s29 }
 0xc16   : > { %p1949_p8 = pnand %p1948_p4, %p1770_p5  ;;  %p1956_p0 = por %p1955_p13, %p1954_p9 }
 0xc18   : > { %p1950_p10 = pneg %p1949_p8 }
 0xc1a   : > { %p1957_p7 = pnand %p1956_p0, %p1950_p10 }
 0xc1c   : > { %1960 = shalt.err (!%p1957_p7)
}
 0xc1d   : > { %s1961_s22 = scalar_lea.hbm %s2490_s10, 32 }
 0xc1e   : > { %p1962_p2 = scmp.ne.s32.totalorder %s2490_s10, %s1961_s22  ;;  %p1967_p6 = scmp.lt.u32.totalorder %s1961_s22, %s2490_s10 }
 0xc20   : > { %p1963_p12 = pnand %p1962_p2, %p1770_p5 }
 0xc22   : > { %p1964_p1 = pneg %p1963_p12 }
 0xc24   : > { %p1969_p3 = pnand %p1967_p6, %p1964_p1 }
 0xc26   : > { %1972 = shalt.err (!%p1969_p3)
}
 0xc27   : > { %1753 = dma.vmem_to_hbm [thread:$0]  (%p1770_p5), %s1442_s3, 32, %s2490_s10, [#allocation5]  }
 0xc28   : > { %1998 = dma.done.wait (%p1770_p5), [#allocation5], 32  }
 0xc29   : > { %2000 = vsyncadd (%p1770_p5), [#allocation5], 4294967264 }
 0xc2a PF: > { %s2512_s7 = sld [smem:[#allocation13_spill]]  ;;  %p22_p11 = scmp.ge.s32.totalorder %s2103_s17, 4  }
 0xc2b   : > { %s2513_s13 = smov %s2007_s14  ;;  %s2514_s14 = smov %s2011_s15 }
 0xc2c   : > { %s2516_s16 = smov %s2103_s17  ;;  %24 = sbr.rel (!%p22_p11) target bundleno = 10 (0xa), region = 136 }
 0xc30   : > { %s2515_s15 = smov %s2512_s7 }
 0xc33   :  { %1454 = vsyncpa [#allocation4], 1 }
 0xc34   :  { %1456 = vsyncpa [#allocation4 + $0x1], 1 }
 0xc35   :  { %1457 = vsyncpa [#allocation7], 1 }
 0xc36   :  { %1459 = vsyncpa [#allocation7 + $0x1], 1 }
 0xc37   :  { %1460 = vsyncpa [#allocation5], 1 }
 0xc38   :  { %1462 = vsyncpa [#allocation5 + $0x1], 1 }

</bundles_post_ra>
